<compile_context>
chip_gen: v7x
topology: tpu7x:2x2x1
jax: 0.10.0
libtpu: 0.0.40
codegen_flags: <defaults>
</compile_context>

<pallas_src>
import functools

import jax
import jax.numpy as jnp
from jax.experimental import pallas as pl
from jax.experimental.pallas import tpu as pltpu


def _round_up(v, m):
    return ((v + m - 1) // m) * m


def _gfft_kernel(x_ref, b_ref, o_ref):
    # Hot path: MXU matmul (x_tile @ B) followed by elementwise sin on the VPU.
    acc = jnp.dot(x_ref[...], b_ref[...], preferred_element_type=jnp.float32)
    o_ref[...] = jnp.sin(acc).astype(o_ref.dtype)


@functools.partial(jax.jit, static_argnames=("tile_n",))
def _gfft_padded(x, B, tile_n):
    """Pads N (rows) and M (output lanes) and runs the tiled Pallas kernel."""
    N, C = x.shape
    C2, M = B.shape
    assert C == C2

    # Lane-dense output: pad mapping dim to a multiple of 128.
    M_pad = _round_up(M, 128)
    # Pad rows so the grid divides evenly; padded rows are zeros -> sin(0)=0.
    N_pad = _round_up(N, tile_n)

    x_p = x if N_pad == N else jnp.pad(x, ((0, N_pad - N), (0, 0)))
    B_p = B if M_pad == M else jnp.pad(B, ((0, 0), (0, M_pad - M)))

    grid = (N_pad // tile_n,)
    y = pl.pallas_call(
        _gfft_kernel,
        out_shape=jax.ShapeDtypeStruct((N_pad, M_pad), x.dtype),
        grid_spec=pltpu.PrefetchScalarGridSpec(
            num_scalar_prefetch=0,
            grid=grid,
            in_specs=[
                # x tile: (tile_n, C). C equals the full array dim so the
                # (8,128) rule is satisfied via the full-extent dim; tile_n is
                # a multiple of 8 by construction.
                pl.BlockSpec((tile_n, C), lambda i: (i, 0)),
                # B is tiny (C x M_pad); keep the whole matrix resident.
                pl.BlockSpec((C, M_pad), lambda i: (0, 0)),
            ],
            out_specs=pl.BlockSpec((tile_n, M_pad), lambda i: (i, 0)),
        ),
        compiler_params=pltpu.CompilerParams(
            dimension_semantics=("parallel",),
            # Generous but safe on every generation (v7x physical VMEM = 64 MiB).
            vmem_limit_bytes=48 * 1024 * 1024,
        ),
    )(x_p, B_p)

    return y[:N, :M]


def gaussian_fourier_feature_transform(x, B, tile_n=None):
    """y = sin(x @ B) via a Pallas TPU kernel.

    x: (N, C) float32.  B: (C, M) float32.  Returns (N, M) float32.
    Handles arbitrary N / M by padding internally.
    """
    N, _ = x.shape
    if tile_n is None:
        # Large tiles for bandwidth, but keep >= 2 grid steps so both v7x
        # TensorCores get work, and cap at 4096 rows (~4 MiB double-buffered
        # output with M_pad=128) to stay well inside v7x's 64 MiB VMEM.
        half = _round_up(max(1, (N + 1) // 2), 128)
        tile_n = min(4096, max(128, half))
    return _gfft_padded(x, B, tile_n)


class GaussianFourierFeatureTransformPallas:
    """JAX/Pallas port of the PyTorch module. Parameters are initialized
    deterministically in-script (synthetic weights, no checkpoint)."""

    def __init__(self, num_input_channels, mapping_size=93, scale=25, key=None):
        if key is None:
            key = jax.random.PRNGKey(0)
        # Matches nn.Parameter(torch.randn((C, M)) * scale) in shape/semantics.
        self._B = jax.random.normal(
            key, (num_input_channels, mapping_size), dtype=jnp.float32
        ) * scale
        self.embedding_size = mapping_size

    def __call__(self, x):
        assert x.ndim == 2, f"Expected 2D input (got {x.ndim}D input)"
        return gaussian_fourier_feature_transform(x, self._B)


if __name__ == "__main__":
    key = jax.random.PRNGKey(0)
    k_param, k_x = jax.random.split(key)

    num_input_channels = 3     # e.g. 3D point coordinates
    mapping_size = 93          # module default (padded to 128 inside the kernel)
    N = 250                    # deliberately NOT a multiple of the tile: wrapper pads

    module = GaussianFourierFeatureTransformPallas(
        num_input_channels, mapping_size=mapping_size, scale=25, key=k_param
    )
    x = jax.random.normal(k_x, (N, num_input_channels), dtype=jnp.float32)

    y = module(x)
    y = jax.block_until_ready(y)

    # Reference check against plain JAX.
    y_ref = jnp.sin(x @ module._B)
    assert y.shape == (N, mapping_size)
    assert jnp.allclose(y, y_ref, atol=1e-5, rtol=1e-5)

    print("KERNEL_OK")
</pallas_src>

<mosaic_0001>
module attributes {stable_mosaic.version = 11 : i64} {
  func.func @_gfft_kernel(%arg0: i32, %arg1: memref<128x3xf32, #tpu.memory_space<vmem>>, %arg2: memref<3x128xf32, #tpu.memory_space<vmem>>, %arg3: memref<128x128xf32, #tpu.memory_space<vmem>>) attributes {dimension_semantics = [#tpu.dimension_semantics<parallel>], iteration_bounds = array<i64: 2>, scalar_prefetch = 0 : i64, scratch_operands = 0 : i64, tpu.core_type = #tpu.core_type<tc>, window_params = [{transform_indices = @transform_0, window_bounds = array<i64: 128, 3>}, {pipeline_mode = #tpu.pipeline_mode<synchronous>, transform_indices = @transform_1, window_bounds = array<i64: 3, 128>}, {transform_indices = @transform_2, window_bounds = array<i64: 128, 128>}]} {
    %c0 = arith.constant 0 : index
    %c0_0 = arith.constant 0 : index
    %0 = vector.load %arg1[%c0, %c0_0] : memref<128x3xf32, #tpu.memory_space<vmem>>, vector<128x3xf32>
    %c0_1 = arith.constant 0 : index
    %c0_2 = arith.constant 0 : index
    %1 = vector.load %arg2[%c0_1, %c0_2] : memref<3x128xf32, #tpu.memory_space<vmem>>, vector<3x128xf32>
    %cst = arith.constant dense<0.000000e+00> : vector<128x128xf32>
    %2 = tpu.matmul %0, %1, %cst {dimension_numbers = #tpu.dot_dimension_numbers<[1], [0], [0], [1], [0, 0, 1, 1], [], []>} : vector<128x3xf32>, vector<3x128xf32>, vector<128x128xf32> -> vector<128x128xf32>
    %3 = math.sin %2 : vector<128x128xf32>
    %c0_3 = arith.constant 0 : index
    %c0_4 = arith.constant 0 : index
    %4 = vector.load %arg3[%c0_3, %c0_4] : memref<128x128xf32, #tpu.memory_space<vmem>>, vector<128x128xf32>
    tpu.vector_store %arg3[%c0_3, %c0_4], %3 {strides = array<i32>} : memref<128x128xf32, #tpu.memory_space<vmem>>, vector<128x128xf32>,
    return
  }
  func.func @transform_0(%arg0: i32) -> (i32, i32) {
    %c0_i32 = arith.constant 0 : i32
    %c0_i32_0 = arith.constant 0 : i32
    return %arg0, %c0_i32 : i32, i32
  }
  func.func @transform_1(%arg0: i32) -> (i32, i32) {
    %c0_i32 = arith.constant 0 : i32
    %c0_i32_0 = arith.constant 0 : i32
    %c0_i32_1 = arith.constant 0 : i32
    return %c0_i32, %c0_i32_0 : i32, i32
  }
  func.func @transform_2(%arg0: i32) -> (i32, i32) {
    %c0_i32 = arith.constant 0 : i32
    %c0_i32_0 = arith.constant 0 : i32
    return %arg0, %c0_i32 : i32, i32
  }
}

</mosaic_0001>

<bundles_post_ra>
// kernel: _gfft_padded.1
= control target key start
LH: loop header
LB: loop body
LE: loop exit
PB: predicated region body
PF: predicated region fallthrough
CT: control target
= control target key end

     0   :  { %s2406_s9 = smov 0   ;;  %s3669_s0 = inlined_call_operand.vmem [shape: f32[256,3], index: 0, kind: input, shape index: {}]   ;;  %s3670_s1 = inlined_call_operand.vmem [shape: f32[3,128], index: 1, kind: input, shape index: {}]   ;;  %s3671_s2 = inlined_call_operand.vmem [shape: f32[256,128], index: 2, kind: output, shape index: {}]  }
   0x1 LB: > { %s2098_s10 = sadd.s32 4294967295, %s2383_s9   ;;  %p2102_p0 = scmp.ge.s32.totalorder %s2383_s9, 1  ;;  %s2383_s9 = sphi %s2406_s9, %s12_s9  }
   0x2   : > { %p113_p1 = scmp.lt.s32.totalorder %s2383_s9, 3 }
   0x4   : > { %p114_p2 = pnand %p2102_p0, %p113_p1 }
   0x5   : > { %v163_v0 = vld [vmem:[%s3670_s1] sm:$0x7] (!%p114_p2)  ;;  %vm213_vm0 = vcmask (!%p114_p2), 1042432   ;;  %s2103_s13 = sshll.u32 (!%p114_p2), %s2098_s10, 4  ;;  %vm164_vm1 = vcmask (!%p114_p2), 23552  }
   0x6   : > { %117 = sbr.rel (%p114_p2) target bundleno = 659 (0x293), region = 28  ;;  %2207 = vmatprep.subr.msk.mxu0 (!%p114_p2), %vm213_vm0, %v163_v0  ;;  %2233 = vmatprep.subr.msk.mxu1 (!%p114_p2), %vm213_vm0, %v163_v0  ;;  %p136_p3 = scmp.lt.s32.totalorder (!%p114_p2), %s2103_s13, 31  ;;  %v2385_v53 = vmov (!%p114_p2), 683565275   ;;  %v2386_v57 = vmov (!%p114_p2), 2475754826  }
   0x7   : > { %2208 = vmatpush3.msk.msra.mxu0 (!%p114_p2), %vm213_vm0, %v163_v0  ;;  %2234 = vmatpush3.msk.msra.mxu1 (!%p114_p2), %vm213_vm0, %v163_v0  ;;  %v2387_v59 = vmov (!%p114_p2), 2131351028   ;;  %v2388_v61 = vmov (!%p114_p2), 2102212464   ;;  %v2389_v63 = vmov (!%p114_p2), 920167782  }
   0xd   : > { %s3701_s13 = smov (!%p136_p3, %s2103_s13), 31 }
   0xe   : > { %s2104_s14 = sshll.u32 %s3701_s13, 3 }
   0xf   : > { %s139_s17 = scalar_lea.vmem %s3669_s0, %s2104_s14  ;;  %s2745_s20 = scalar_lea.vmem %s3671_s2, %s2104_s14 }
  0x10   : > { %v147_v1 = vld [vmem:[%s139_s17] sm:$0xff]  ;;  %v148_v3 = vld [vmem:[%s139_s17 + $0x8] sm:$0xff]  ;;  %v149_v5 = vld [vmem:[%s139_s17 + $0x10] sm:$0xff] }
  0x11   : > { %v155_v2 = vld [vmem:[%s139_s17 + $0x40] sm:$0xff]  ;;  %2209 = vmatprep.mubr.msk.f32.mxu0 %vm164_vm1, %v147_v1  ;;  %v156_v4 = vld [vmem:[%s139_s17 + $0x48] sm:$0xff]  ;;  %v157_v6 = vld [vmem:[%s139_s17 + $0x50] sm:$0xff] }
  0x12   : > { %2221 = vmatprep.mubr.msk.f32.mxu1 %vm164_vm1, %v155_v2  ;;  %2210 = vmatmul.mubr.msk.f32.vlgmr.msra.gmra.mrb[0].mxu0 %vm164_vm1, %v148_v3  ;;  %v150_v7 = vld [vmem:[%s139_s17 + $0x18] sm:$0xff]  ;;  %v151_v9 = vld [vmem:[%s139_s17 + $0x20] sm:$0xff]  ;;  %v152_v11 = vld [vmem:[%s139_s17 + $0x28] sm:$0xff] }
  0x13   : > { %2222 = vmatmul.mubr.msk.f32.vlgmr.msra.gmra.mrb[0].mxu1 %vm164_vm1, %v156_v4  ;;  %2212 = vmatprep.mubr.msk.f32.mxu0 %vm164_vm1, %v149_v5  ;;  %v158_v8 = vld [vmem:[%s139_s17 + $0x58] sm:$0xff]  ;;  %v159_v10 = vld [vmem:[%s139_s17 + $0x60] sm:$0xff]  ;;  %v160_v12 = vld [vmem:[%s139_s17 + $0x68] sm:$0xff] }
  0x14   : > { %2224 = vmatprep.mubr.msk.f32.mxu1 %vm164_vm1, %v157_v6  ;;  %v153_v13 = vld [vmem:[%s139_s17 + $0x30] sm:$0xff]  ;;  %v154_v15 = vld [vmem:[%s139_s17 + $0x38] sm:$0xff]  ;;  %v2390_v6 = vmov 1326507024  }
  0x15   : > { %v161_v14 = vld [vmem:[%s139_s17 + $0x70] sm:$0xff]  ;;  %v162_v16 = vld [vmem:[%s139_s17 + $0x78] sm:$0xff] }
  0x16   : > { %2213 = vmatmul.mubr.msk.f32.gmra.mrb[2].mxu0 %vm164_vm1, %v150_v7 }
  0x17   : > { %2225 = vmatmul.mubr.msk.f32.gmra.mrb[2].mxu1 %vm164_vm1, %v158_v8  ;;  %2215 = vmatprep.mubr.msk.f32.mxu0 %vm164_vm1, %v151_v9 }
  0x18   : > { %2227 = vmatprep.mubr.msk.f32.mxu1 %vm164_vm1, %v159_v10 }
  0x1a   : > { %2216 = vmatmul.mubr.msk.f32.gmra.mrb[4].mxu0 %vm164_vm1, %v152_v11 }
  0x1b   : > { %2228 = vmatmul.mubr.msk.f32.gmra.mrb[4].mxu1 %vm164_vm1, %v160_v12  ;;  %2218 = vmatprep.mubr.msk.f32.mxu0 %vm164_vm1, %v153_v13 }
  0x1c   : > { %2230 = vmatprep.mubr.msk.f32.mxu1 %vm164_vm1, %v161_v14 }
  0x1e   : > { %2219 = vmatmul.mubr.msk.f32.gmra.mrb[6].mxu0 %vm164_vm1, %v154_v15 }
  0x1f   : > { %2231 = vmatmul.mubr.msk.f32.gmra.mrb[6].mxu1 %vm164_vm1, %v162_v16 }
  0xe5   : > { %v2441_v17 = vpop.f32.mrb[0].mxu0 }
  0xe6   : > { %v2443_v18 = vpop.f32.mrb[0].mxu1  ;;  %v466_v19 = vand.u32 2147483647, %v2441_v17  ;;  %v469_v20 = vand.u32 2139095040, %v2441_v17  ;;  %v2447_v21 = vpop.f32.mrb[1].mxu0  ;;  %vm468_vm15 = vcmp.lt.s32.totalorder %v2441_v17, 0 }
  0xe7   : > { %v2449_v22 = vpop.f32.mrb[1].mxu1  ;;  %v1298_v23 = vand.u32 2147483647, %v2443_v18  ;;  %v1301_v24 = vand.u32 2139095040, %v2443_v18  ;;  %v365_v29 = vand.u32 2139095040, %v2447_v21 }
  0xe8   : > { %v470_v25 = vshrl.u32 %v469_v20, 23  ;;  %v473_v26 = vand.u32 8388607, %v466_v19  ;;  %v362_v40 = vand.u32 2147483647, %v2447_v21  ;;  %v1197_v51 = vand.u32 2139095040, %v2449_v22 }
  0xe9   : > { %v1302_v27 = vshrl.u32 %v1301_v24, 23  ;;  %v1305_v28 = vand.u32 8388607, %v1298_v23  ;;  %v2458_v31 = vpop.f32.mrb[2].mxu0  ;;  %v366_v34 = vshrl.u32 %v365_v29, 23 }
  0xea   : > { %v2128_v30 = vadd.s32 4294967169, %v470_v25  ;;  %v2460_v32 = vpop.f32.mrb[2].mxu1  ;;  %v2462_v35 = vpop.f32.mrb[3].mxu0  ;;  %v474_v36 = vor.u32 8388608, %v473_v26  ;;  %v2473_v49 = vand.u32 8388607, %v362_v40 }
  0xeb   : > { %v2160_v33 = vadd.s32 4294967169, %v1302_v27  ;;  %v1306_v38 = vor.u32 8388608, %v1305_v28  ;;  %v2124_v41 = vadd.s32 4294967169, %v366_v34  ;;  %v2465_v42 = vpop.f32.mrb[3].mxu1  ;;  %vm2565_vm0 = vcmp.le.f32.partialorder %v466_v19, 0.7853982 }
  0xec   : > { %v476_v37 = vadd.s32 1, %v2128_v30  ;;  %v2467_v46 = vshll.u32 %v474_v36, 8 }
  0xed   : > { %v1308_v39 = vadd.s32 1, %v2160_v33  ;;  %v2469_v48 = vshll.u32 %v1306_v38, 8  ;;  %v2475_v50 = vadd.s32 1, %v2124_v41 }
  0xee   : > { %vm477_vm2 = vcmp.gt.s32.totalorder %v476_v37, 0 }
  0xef   : > { %v478_v43 = vsel %vm477_vm2, %v476_v37, 0  ;;  %vm1309_vm3 = vcmp.gt.s32.totalorder %v1308_v39, 0  ;;  %vm373_vm8 = vcmp.gt.s32.totalorder %v2475_v50, 0 }
  0xf0   : > { %v479_v44 = vshrl.u32 %v478_v43, 5  ;;  %v480_v45 = vand.u32 31, %v478_v43  ;;  %v1310_v47 = vsel %vm1309_vm3, %v1308_v39, 0 }
  0xf1   : > { %v2479_v55 = vshrl.u32 %v1310_v47, 5  ;;  %v1312_v56 = vand.u32 31, %v1310_v47 }
  0xf2   : > { %v481_v52 = vsub.s32 32, %v480_v45  ;;  %v483_v54 = vshll.u32 %v2385_v53, %v480_v45  ;;  %v486_v58 = vshll.u32 %v2386_v57, %v480_v45  ;;  %v489_v60 = vshll.u32 %v2387_v59, %v480_v45 }
  0xf3   : > { %v492_v62 = vshll.u32 %v2388_v61, %v480_v45  ;;  %v495_v0 = vshll.u32 %v2389_v63, %v480_v45  ;;  %vm498_vm4 = vcmp.lt.s32.totalorder %v479_v44, 1  ;;  %vm499_vm5 = vcmp.lt.s32.totalorder %v479_v44, 2 }
  0xf4   : > { %v484_v1 = vshrl.u32 %v2386_v57, %v481_v52  ;;  %v487_v2 = vshrl.u32 %v2387_v59, %v481_v52  ;;  %v490_v3 = vshrl.u32 %v2388_v61, %v481_v52  ;;  %v482_v4 = vshrl.u32 %v2385_v53, %v481_v52 }
  0xf5   : > { %v493_v5 = vshrl.u32 %v2389_v63, %v481_v52  ;;  %v496_v7 = vshrl.u32 %v2390_v6, %v481_v52  ;;  %v1313_v11 = vsub.s32 32, %v1312_v56  ;;  %vm500_vm6 = vcmp.lt.s32.totalorder %v479_v44, 3 }
  0xf6   : > { %v485_v8 = vor.u32 %v484_v1, %v483_v54  ;;  %v488_v9 = vor.u32 %v487_v2, %v486_v58  ;;  %v491_v10 = vor.u32 %v490_v3, %v489_v60  ;;  %vm501_vm7 = vcmp.lt.s32.totalorder %v479_v44, 4 }
  0xf7   : > { %v494_v12 = vor.u32 %v493_v5, %v492_v62  ;;  %v497_v13 = vor.u32 %v496_v7, %v495_v0  ;;  %v1315_v27 = vshll.u32 %v2385_v53, %v1312_v56  ;;  %v1316_v30 = vshrl.u32 %v2386_v57, %v1313_v11 }
  0xf8   : > { %v502_v14 = vsel %vm498_vm4, %v482_v4, %v485_v8  ;;  %v503_v15 = vsel %vm501_vm7, %v491_v10, 2102212464  ;;  %v506_v16 = vsel %vm498_vm4, %v485_v8, %v488_v9  ;;  %v510_v20 = vsel %vm498_vm4, %v488_v9, %v491_v10 }
  0xf9   : > { %v504_v24 = vsel %vm500_vm6, %v488_v9, %v503_v15  ;;  %v507_v25 = vsel %vm501_vm7, %v494_v12, 920167782  ;;  %v511_v26 = vsel %vm501_vm7, %v497_v13, 1326507024  ;;  %v1318_v33 = vshll.u32 %v2386_v57, %v1312_v56 }
  0xfa   : > { %v508_v28 = vsel %vm500_vm6, %v491_v10, %v507_v25  ;;  %v512_v29 = vsel %vm500_vm6, %v494_v12, %v511_v26  ;;  %v505_v34 = vsel %vm499_vm5, %v502_v14, %v504_v24  ;;  %v1319_v38 = vshrl.u32 %v2387_v59, %v1313_v11 }
  0xfb   : > { %v509_v36 = vsel %vm499_vm5, %v506_v16, %v508_v28  ;;  %v513_v37 = vsel %vm499_vm5, %v510_v20, %v512_v29  ;;  %v1317_v47 = vor.u32 %v1316_v30, %v1315_v27  ;;  %v1321_v54 = vshll.u32 %v2387_v59, %v1312_v56 }
  0xfc   : > { %v2503_v39 = vmul.u32.u64.low %v2467_v46, %v513_v37  ;;  %v2504_v41 = vmul.u32.u64.high %v2467_v46, %v513_v37, %v2503_v39  ;;  %v2507_v43 = vmul.u32.u64.low %v2467_v46, %v509_v36  ;;  %v2508_v45 = vmul.u32.u64.high %v2467_v46, %v509_v36, %v2507_v43 }
  0xfd   : > { %v1320_v52 = vor.u32 %v1319_v38, %v1318_v33  ;;  %v1322_v58 = vshrl.u32 %v2388_v61, %v1313_v11  ;;  %v1314_v60 = vshrl.u32 %v2385_v53, %v1313_v11  ;;  %v1324_v44 = vshll.u32 %v2388_v61, %v1312_v56  ;;  %v2545_v38 = vpop.f32.mrb[4].mxu0 }
  0xfe   : > { %v1325_v62 = vshrl.u32 %v2389_v63, %v1313_v11  ;;  %v1328_v0 = vshrl.u32 %v2390_v6, %v1313_v11  ;;  %v521_v1 = vmul.u32 %v2467_v46, %v505_v34  ;;  %v1327_v3 = vshll.u32 %v2389_v63, %v1312_v56 }
  0xff   : > { %v1323_v2 = vor.u32 %v1322_v58, %v1321_v54  ;;  %vm1330_vm9 = vcmp.lt.s32.totalorder %v2479_v55, 1  ;;  %vm523_vm10 = vc.u32 %v2504_v41, %v2507_v43  ;;  %v524_v4 = vadd.s32 1, %v2508_v45 }
 0x100   : > { %v1326_v5 = vor.u32 %v1325_v62, %v1324_v44  ;;  %vm1331_vm11 = vcmp.lt.s32.totalorder %v2479_v55, 2  ;;  %v1329_v7 = vor.u32 %v1328_v0, %v1327_v3  ;;  %vm1332_vm12 = vcmp.lt.s32.totalorder %v2479_v55, 3 }
 0x101   : > { %vm1333_vm13 = vcmp.lt.s32.totalorder %v2479_v55, 4  ;;  %v1338_v8 = vsel %vm1330_vm9, %v1317_v47, %v1320_v52  ;;  %v525_v46 = vsel %vm523_vm10, %v524_v4, %v2508_v45  ;;  %v1342_v56 = vsel %vm1330_vm9, %v1320_v52, %v1323_v2 }
 0x102   : > { %v1335_v9 = vsel %vm1333_vm13, %v1323_v2, 2102212464  ;;  %v1339_v10 = vsel %vm1333_vm13, %v1326_v5, 920167782  ;;  %v526_v11 = vadd.s32 %v525_v46, %v521_v1  ;;  %v1334_v12 = vsel %vm1330_vm9, %v1314_v60, %v1317_v47 }
 0x103   : > { %v1340_v13 = vsel %vm1332_vm12, %v1323_v2, %v1339_v10  ;;  %v1343_v14 = vsel %vm1333_vm13, %v1329_v7, 1326507024  ;;  %v1336_v15 = vsel %vm1332_vm12, %v1320_v52, %v1335_v9  ;;  %v374_v24 = vsel %vm373_vm8, %v2475_v50, 0 }
 0x104   : > { %v1341_v16 = vsel %vm1331_vm11, %v1338_v8, %v1340_v13  ;;  %v1344_v20 = vsel %vm1332_vm12, %v1326_v5, %v1343_v14  ;;  %v527_v25 = vadd.s32 536870912, %v526_v11  ;;  %v1194_v33 = vand.u32 2147483647, %v2449_v22 }
 0x105   : > { %v1345_v26 = vsel %vm1331_vm11, %v1342_v56, %v1344_v20  ;;  %v2533_v27 = vmul.u32.u64.low %v2469_v48, %v1341_v16  ;;  %v2534_v28 = vmul.u32.u64.high %v2469_v48, %v1341_v16, %v2533_v27  ;;  %v1337_v36 = vsel %vm1331_vm11, %v1334_v12, %v1336_v15 }
 0x106   : > { %v2538_v29 = vmul.u32.u64.low %v2469_v48, %v1345_v26  ;;  %v2539_v30 = vmul.u32.u64.high %v2469_v48, %v1345_v26, %v2538_v29  ;;  %v528_v34 = vshrl.u32 %v527_v25, 30  ;;  %v370_v50 = vor.u32 8388608, %v2473_v49 }
 0x107   : > { %v376_v37 = vand.u32 31, %v374_v24  ;;  %v1356_v45 = vadd.s32 1, %v2534_v28  ;;  %v1198_v52 = vshrl.u32 %v1197_v51, 23  ;;  %v1353_v54 = vmul.u32 %v2469_v48, %v1337_v36 }
 0x108   : > { %v529_v39 = vshll.u32 %v528_v34, 30  ;;  %vm1355_vm14 = vc.u32 %v2539_v30, %v2533_v27  ;;  %v2555_v55 = vand.u32 8388607, %v1194_v33  ;;  %v2561_v60 = vshll.u32 %v370_v50, 8 }
 0x109   : > { %v377_v47 = vsub.s32 32, %v376_v37  ;;  %v1357_v58 = vsel %vm1355_vm14, %v1356_v45, %v2534_v28  ;;  %v522_v48 = vadd.s32 %v2507_v43, %v2504_v41  ;;  %v2570_v62 = vshrl.u32 %v374_v24, 5 }
 0x10a   : > { %v2558_v49 = vsub.s32 %v526_v11, %v529_v39  ;;  %v1358_v44 = vadd.s32 %v1357_v58, %v1353_v54  ;;  %v2156_v4 = vadd.s32 4294967169, %v1198_v52  ;;  %v552_v5 = vsub.s32 4, %v528_v34 }
 0x10b   : > { %v380_v0 = vshrl.u32 %v2386_v57, %v377_v47  ;;  %v383_v2 = vshrl.u32 %v2387_v59, %v377_v47  ;;  %v386_v3 = vshrl.u32 %v2388_v61, %v377_v47  ;;  %v379_v19 = vshll.u32 %v2385_v53, %v376_v37 }
 0x10c   : > { %v532_v1 = vsub.s32 0, %v2558_v49  ;;  %v1359_v7 = vadd.s32 536870912, %v1358_v44  ;;  %v1202_v8 = vor.u32 8388608, %v2555_v55  ;;  %v382_v43 = vshll.u32 %v2386_v57, %v376_v37 }
 0x10d   : > { %v385_v46 = vshll.u32 %v2387_v59, %v376_v37  ;;  %v389_v9 = vshrl.u32 %v2389_v63, %v377_v47  ;;  %v381_v56 = vor.u32 %v380_v0, %v379_v19  ;;  %v388_v11 = vshll.u32 %v2388_v61, %v376_v37 }
 0x10e   : > { %v2129_v41 = vmin.u32 %v532_v1, %v2558_v49  ;;  %v1360_v10 = vshrl.u32 %v1359_v7, 30  ;;  %v392_v12 = vshrl.u32 %v2390_v6, %v377_v47  ;;  %v384_v14 = vor.u32 %v383_v2, %v382_v43 }
 0x10f   : > { %v387_v15 = vor.u32 %v386_v3, %v385_v46  ;;  %v391_v16 = vshll.u32 %v2389_v63, %v376_v37  ;;  %v553_v20 = vsel %vm468_vm15, %v552_v5, %v528_v34  ;;  %v390_v25 = vor.u32 %v389_v9, %v388_v11 }
 0x110   : > { %v534_v13 = vclz %v2129_v41  ;;  %v1361_v24 = vshll.u32 %v1360_v10, 30  ;;  %vm394_vm1 = vcmp.lt.s32.totalorder %v2570_v62, 1  ;;  %vm395_vm2 = vcmp.lt.s32.totalorder %v2570_v62, 2 }
 0x111   : > { %v393_v28 = vor.u32 %v392_v12, %v391_v16  ;;  %vm397_vm3 = vcmp.lt.s32.totalorder %v2570_v62, 4  ;;  %vm1300_vm4 = vcmp.lt.s32.totalorder %v2443_v18, 0  ;;  %v378_v36 = vshrl.u32 %v2385_v53, %v377_v47 }
 0x112   : > { %v2130_v26 = vadd.s32 4294967294, %v534_v13  ;;  %v2591_v29 = vsub.s32 %v1358_v44, %v1361_v24  ;;  %vm396_vm5 = vcmp.lt.s32.totalorder %v2570_v62, 3  ;;  %v403_v34 = vsel %vm397_vm3, %v390_v25, 920167782 }
 0x113   : > { %v555_v50 = vsel %vm2565_vm0, 0, %v553_v20  ;;  %v402_v37 = vsel %vm394_vm1, %v381_v56, %v384_v14  ;;  %v404_v39 = vsel %vm396_vm5, %v387_v15, %v403_v34  ;;  %v1384_v54 = vsub.s32 4, %v1360_v10 }
 0x114   : > { %vm2131_vm6 = vcmp.lt.s32.totalorder %v2130_v26, 0  ;;  %v1364_v52 = vsub.s32 0, %v2591_v29  ;;  %v406_v47 = vsel %vm394_vm1, %v384_v14, %v387_v15  ;;  %vm2608_vm7 = vcmp.le.f32.partialorder %v1298_v23, 0.7853982 }
 0x115   : > { %v537_v45 = vsel %vm2131_vm6, 0, %v2130_v26  ;;  %v399_v1 = vsel %vm397_vm3, %v387_v15, 2102212464  ;;  %v407_v2 = vsel %vm397_vm3, %v393_v28, 1326507024  ;;  %v405_v7 = vsel %vm395_vm2, %v402_v37, %v404_v39  ;;  %v2641_v28 = vpop.f32.mrb[4].mxu1 }
 0x116   : > { %v538_v58 = vsub.s32 32, %v537_v45  ;;  %v542_v44 = vsub.s32 4294967266, %v537_v45  ;;  %v539_v3 = vshll.u32 %v2558_v49, %v537_v45  ;;  %v2161_v5 = vmin.u32 %v1364_v52, %v2591_v29 }
 0x117   : > { %v408_v19 = vsel %vm396_vm5, %v390_v25, %v407_v2  ;;  %v1204_v46 = vadd.s32 1, %v2156_v4  ;;  %v559_v9 = vadd.s32 3, %v555_v50  ;;  %v398_v12 = vsel %vm394_vm1, %v378_v36, %v381_v56 }
 0x118   : > { %v540_v23 = vshrl.u32 %v522_v48, %v538_v58  ;;  %v543_v41 = vadd.s32 127, %v542_v44  ;;  %v409_v43 = vsel %vm395_vm2, %v406_v47, %v408_v19  ;;  %v1366_v11 = vclz %v2161_v5 }
 0x119   : > { %v400_v49 = vsel %vm396_vm5, %v384_v14, %v399_v1  ;;  %v2629_v16 = vmul.u32.u64.low %v2561_v60, %v409_v43  ;;  %v2630_v20 = vmul.u32.u64.high %v2561_v60, %v409_v43, %v2629_v16  ;;  %vm1205_vm8 = vcmp.gt.s32.totalorder %v1204_v46, 0 }
 0x11a   : > { %v541_v13 = vor.u32 %v540_v23, %v539_v3  ;;  %v544_v15 = vshll.u32 %v543_v41, 23  ;;  %v2162_v48 = vadd.s32 4294967294, %v1366_v11  ;;  %v1354_v56 = vadd.s32 %v2533_v27, %v2539_v30 }
 0x11b   : > { %v2633_v24 = vmul.u32.u64.low %v2561_v60, %v405_v7  ;;  %v2634_v25 = vmul.u32.u64.high %v2561_v60, %v405_v7, %v2633_v24  ;;  %v1385_v14 = vsel %vm1300_vm4, %v1384_v54, %v1360_v10  ;;  %v1206_v26 = vsel %vm1205_vm8, %v1204_v46, 0 }
 0x11c   : > { %v545_v4 = vor.u32 4788187, %v544_v15  ;;  %v2643_v36 = vand.u32 3, %v559_v9  ;;  %vm2163_vm9 = vcmp.lt.s32.totalorder %v2162_v48, 0  ;;  %v401_v34 = vsel %vm395_vm2, %v398_v12, %v400_v49 }
 0x11d   : > { %v1208_v50 = vand.u32 31, %v1206_v26  ;;  %v548_v39 = vcvt.s32.f32 %v541_v13  ;;  %v1369_v45 = vsel %vm2163_vm9, 0, %v2162_v48  ;;  %vm419_vm10 = vc.u32 %v2630_v20, %v2633_v24 }
 0x11e   : > { %v546_v37 = vand.u32 2147483647, %v545_v4  ;;  %v1370_v27 = vsub.s32 32, %v1369_v45  ;;  %v1374_v30 = vsub.s32 4294967266, %v1369_v45  ;;  %v1387_v10 = vsel %vm2608_vm7, 0, %v1385_v14 }
 0x11f   : > { %v420_v52 = vadd.s32 1, %v2634_v25  ;;  %v417_v47 = vmul.u32 %v2561_v60, %v401_v34  ;;  %v2653_v58 = vshrl.u32 %v1206_v26, 5  ;;  %v1209_v62 = vsub.s32 32, %v1208_v50 }
 0x120   : > { %v549_v54 = vmul.f32 %v548_v39, %v546_v37  ;;  %v1371_v44 = vshll.u32 %v2591_v29, %v1369_v45  ;;  %v1372_v1 = vshrl.u32 %v1354_v56, %v1370_v27  ;;  %v1375_v2 = vadd.s32 127, %v1374_v30 }
 0x121   : > { %v421_v3 = vsel %vm419_vm10, %v420_v52, %v2634_v25  ;;  %v1211_v19 = vshll.u32 %v2385_v53, %v1208_v50  ;;  %v1212_v23 = vshrl.u32 %v2386_v57, %v1209_v62  ;;  %v1214_v46 = vshll.u32 %v2386_v57, %v1208_v50 }
 0x122   : > { %v550_v5 = vxor.u32 2147483648, %v549_v54  ;;  %v422_v7 = vadd.s32 %v421_v3, %v417_v47  ;;  %v1373_v41 = vor.u32 %v1372_v1, %v1371_v44  ;;  %v1376_v43 = vshll.u32 %v1375_v2, 23 }
 0x123   : > { %v1215_v60 = vshrl.u32 %v2387_v59, %v1209_v62  ;;  %v1217_v11 = vshll.u32 %v2387_v59, %v1208_v50  ;;  %v1218_v12 = vshrl.u32 %v2388_v61, %v1209_v62  ;;  %v1213_v15 = vor.u32 %v1212_v23, %v1211_v19 }
 0x124   : > { %v551_v9 = vsel %vm468_vm15, %v550_v5, %v549_v54  ;;  %v423_v29 = vadd.s32 536870912, %v422_v7  ;;  %v1377_v13 = vor.u32 4788187, %v1376_v43  ;;  %v1220_v16 = vshll.u32 %v2388_v61, %v1208_v50 }
 0x125   : > { %v554_v49 = vsel %vm2565_vm0, %v2441_v17, %v551_v9  ;;  %v1380_v48 = vcvt.s32.f32 %v1373_v41  ;;  %v1221_v4 = vshrl.u32 %v2389_v63, %v1209_v62  ;;  %v1216_v14 = vor.u32 %v1215_v60, %v1214_v46 }
 0x126   : > { %2313 = vcosq.f32 %v554_v49  ;;  %v2669_v25 = vshrl.u32 %v423_v29, 30  ;;  %v1378_v56 = vand.u32 2147483647, %v1377_v13  ;;  %v1224_v26 = vshrl.u32 %v2390_v6, %v1209_v62 }
 0x127   : > { %2315 = vsinq.f32 %v554_v49  ;;  %v1222_v37 = vor.u32 %v1221_v4, %v1220_v16  ;;  %v1219_v39 = vor.u32 %v1218_v12, %v1217_v11  ;;  %v1223_v45 = vshll.u32 %v2389_v63, %v1208_v50 }
 0x128   : > { %v425_v34 = vshll.u32 %v2669_v25, 30  ;;  %v1381_v51 = vmul.f32 %v1380_v48, %v1378_v56  ;;  %v1391_v27 = vadd.s32 3, %v1387_v10  ;;  %vm1226_vm11 = vcmp.lt.s32.totalorder %v2653_v58, 1 }
 0x129   : > { %v2680_v52 = vshll.u32 %v1202_v8, 8  ;;  %vm562_vm12 = vcmp.eq.s32.totalorder %v2643_v36, 0  ;;  %v1225_v47 = vor.u32 %v1224_v26, %v1223_v45  ;;  %vm1229_vm13 = vcmp.lt.s32.totalorder %v2653_v58, 4 }
 0x12a   : > { %v2675_v30 = vsub.s32 %v422_v7, %v425_v34  ;;  %v1382_v54 = vxor.u32 2147483648, %v1381_v51  ;;  %v1234_v44 = vsel %vm1226_vm11, %v1213_v15, %v1216_v14  ;;  %vm561_vm14 = vcmp.lt.s32.totalorder %v2643_v36, 2 }
 0x12b   : > { %v1210_v10 = vshrl.u32 %v2385_v53, %v1209_v62  ;;  %vm1228_vm15 = vcmp.lt.s32.totalorder %v2653_v58, 3  ;;  %v1235_v55 = vsel %vm1229_vm13, %v1222_v37, 920167782  ;;  %vm558_vm0 = vweird.f32 %v2441_v17 }
 0x12c   : > { %v428_v50 = vsub.s32 0, %v2675_v30  ;;  %v1383_v8 = vsel %vm1300_vm4, %v1382_v54, %v1381_v51  ;;  %vm364_vm1 = vcmp.lt.s32.totalorder %v2447_v21, 0  ;;  %vm1227_vm2 = vcmp.lt.s32.totalorder %v2653_v58, 2 }
 0x12d   : > { %v1231_v1 = vsel %vm1229_vm13, %v1219_v39, 2102212464  ;;  %v1236_v62 = vsel %vm1228_vm15, %v1219_v39, %v1235_v55  ;;  %v1386_v2 = vsel %vm2608_vm7, %v2443_v18, %v1383_v8  ;;  %v1238_v7 = vsel %vm1226_vm11, %v1216_v14, %v1219_v39 }
 0x12e   : > { %v2125_v3 = vmin.u32 %v428_v50, %v2675_v30  ;;  %v1237_v5 = vsel %vm1227_vm2, %v1234_v44, %v1236_v62  ;;  %2317 = vcosq.f32 %v1386_v2  ;;  %v1239_v19 = vsel %vm1229_vm13, %v1225_v47, 1326507024 }
 0x12f   : > { %v2712_v23 = vmul.u32.u64.low %v2680_v52, %v1237_v5  ;;  %v2713_v41 = vmul.u32.u64.high %v2680_v52, %v1237_v5, %v2712_v23  ;;  %vm565_vm3 = vcmp.eq.s32.totalorder %v2643_v36, 2  ;;  %2319 = vsinq.f32 %v1386_v2 }
 0x130   : > { %v2314_v43 = vpop.eup %2313  ;;  %v2717_v0 = vand.u32 3, %v1391_v27  ;;  %vm2721_vm4 = vcmp.le.f32.partialorder %v362_v40, 0.7853982  ;;  %v430_v60 = vclz %v2125_v3  ;;  %v1230_v11 = vsel %vm1226_vm11, %v1210_v10, %v1213_v15 }
 0x131   : > { %v2316_v9 = vpop.eup %2315  ;;  %v566_v29 = vxor.u32 2147483648, %v2314_v43  ;;  %v1232_v12 = vsel %vm1228_vm15, %v1216_v14, %v1231_v1  ;;  %v1240_v49 = vsel %vm1228_vm15, %v1222_v37, %v1239_v19  ;;  %v448_v48 = vsub.s32 4, %v2669_v25 }
 0x132   : > { %v563_v13 = vxor.u32 2147483648, %v2316_v9  ;;  %v2126_v16 = vadd.s32 4294967294, %v430_v60  ;;  %v1241_v40 = vsel %vm1227_vm2, %v1238_v7, %v1240_v49  ;;  %v418_v56 = vadd.s32 %v2633_v24, %v2630_v20  ;;  %v2752_v24 = vpop.f32.mrb[5].mxu0 }
 0x133   : > { %v567_v4 = vsel %vm565_vm3, %v566_v29, %v2316_v9  ;;  %v2737_v26 = vmul.u32.u64.low %v2680_v52, %v1241_v40  ;;  %v2738_v15 = vmul.u32.u64.high %v2680_v52, %v1241_v40, %v2737_v26  ;;  %v1233_v34 = vsel %vm1227_vm2, %v1230_v11, %v1232_v12 }
 0x134   : > { %v564_v14 = vsel %vm562_vm12, %v2314_v43, %v563_v13  ;;  %vm2127_vm5 = vcmp.lt.s32.totalorder %v2126_v16, 0  ;;  %v1252_v20 = vadd.s32 1, %v2713_v41  ;;  %vm1393_vm6 = vcmp.lt.s32.totalorder %v2717_v0, 2 }
 0x135   : > { %v568_v37 = vsel %vm561_vm14, %v564_v14, %v567_v4  ;;  %v433_v51 = vsel %vm2127_vm5, 0, %v2126_v16  ;;  %v674_v39 = vand.u32 2147483647, %v2458_v31  ;;  %v677_v45 = vand.u32 2139095040, %v2458_v31 }
 0x136   : > { %v569_v27 = vsel %vm558_vm0, nan, %v568_v37  ;;  %vm1390_vm7 = vweird.f32 %v2443_v18  ;;  %v434_v58 = vsub.s32 32, %v433_v51  ;;  %v438_v54 = vsub.s32 4294967266, %v433_v51 }
 0x137   : > { %v449_v47 = vsel %vm364_vm1, %v448_v48, %v2669_v25  ;;  %2027 = vst [vmem:[%s2745_s20 + $0x8] sm:$0xff] %v569_v27  ;;  %vm1394_vm8 = vcmp.eq.s32.totalorder %v2717_v0, 0  ;;  %v1249_v36 = vmul.u32 %v2680_v52, %v1233_v34  ;;  %vm1251_vm9 = vc.u32 %v2738_v15, %v2712_v23 }
 0x138   : > { %v678_v44 = vshrl.u32 %v677_v45, 23  ;;  %v435_v17 = vshll.u32 %v2675_v30, %v433_v51  ;;  %v436_v50 = vshrl.u32 %v418_v56, %v434_v58  ;;  %v439_v10 = vadd.s32 127, %v438_v54  ;;  %v2318_v8 = vpop.eup %2317 }
 0x139   : > { %v1253_v55 = vsel %vm1251_vm9, %v1252_v20, %v2713_v41  ;;  %v451_v1 = vsel %vm2721_vm4, 0, %v449_v47  ;;  %v681_v2 = vand.u32 8388607, %v674_v39  ;;  %v2320_v52 = vpop.eup %2319  ;;  %vm1397_vm10 = vcmp.eq.s32.totalorder %v2717_v0, 2 }
 0x13a   : > { %v1254_v25 = vadd.s32 %v1253_v55, %v1249_v36  ;;  %v2136_v62 = vadd.s32 4294967169, %v678_v44  ;;  %v1398_v3 = vxor.u32 2147483648, %v2318_v8  ;;  %v437_v5 = vor.u32 %v436_v50, %v435_v17 }
 0x13b   : > { %v440_v7 = vshll.u32 %v439_v10, 23  ;;  %v1395_v30 = vxor.u32 2147483648, %v2320_v52  ;;  %v1506_v41 = vand.u32 2147483647, %v2460_v32  ;;  %v455_v29 = vadd.s32 3, %v451_v1 }
 0x13c   : > { %v1255_v19 = vadd.s32 536870912, %v1254_v25  ;;  %v684_v43 = vadd.s32 1, %v2136_v62  ;;  %v1399_v60 = vsel %vm1397_vm10, %v1398_v3, %v2320_v52  ;;  %v1509_v11 = vand.u32 2139095040, %v2460_v32 }
 0x13d   : > { %v441_v9 = vor.u32 4788187, %v440_v7  ;;  %v1396_v12 = vsel %vm1394_vm8, %v2318_v8, %v1395_v30  ;;  %v682_v13 = vor.u32 8388608, %v681_v2  ;;  %v444_v40 = vcvt.s32.f32 %v437_v5 }
 0x13e   : > { %v1256_v49 = vshrl.u32 %v1255_v19, 30  ;;  %vm685_vm11 = vcmp.gt.s32.totalorder %v684_v43, 0  ;;  %v1400_v16 = vsel %vm1393_vm6, %v1396_v12, %v1399_v60  ;;  %v1510_v14 = vshrl.u32 %v1509_v11, 23 }
 0x13f   : > { %v442_v48 = vand.u32 2147483647, %v441_v9  ;;  %v686_v4 = vsel %vm685_vm11, %v684_v43, 0  ;;  %v1401_v56 = vsel %vm1390_vm7, nan, %v1400_v16  ;;  %v2787_v34 = vand.u32 8388607, %v1506_v41 }
 0x140   : > { %v1257_v26 = vshll.u32 %v1256_v49, 30  ;;  %2035 = vst [vmem:[%s2745_s20 + $0x48] sm:$0xff] %v1401_v56  ;;  %v688_v37 = vand.u32 31, %v686_v4  ;;  %v2790_v51 = vand.u32 3, %v455_v29  ;;  %vm1196_vm12 = vcmp.lt.s32.totalorder %v2449_v22, 0  ;;  %v2847_v56 = vpop.f32.mrb[5].mxu1 }
 0x141   : > { %v445_v20 = vmul.f32 %v444_v40, %v442_v48  ;;  %v1250_v0 = vadd.s32 %v2712_v23, %v2738_v15  ;;  %v1280_v27 = vsub.s32 4, %v1256_v49  ;;  %v2797_v58 = vshrl.u32 %v686_v4, 5 }
 0x142   : > { %v2795_v45 = vsub.s32 %v1254_v25, %v1257_v26  ;;  %v689_v54 = vsub.s32 32, %v688_v37  ;;  %v2800_v36 = vshll.u32 %v682_v13, 8  ;;  %v2168_v44 = vadd.s32 4294967169, %v1510_v14 }
 0x143   : > { %v446_v18 = vxor.u32 2147483648, %v445_v20  ;;  %v1514_v17 = vor.u32 8388608, %v2787_v34  ;;  %v691_v10 = vshll.u32 %v2385_v53, %v688_v37  ;;  %v694_v1 = vshll.u32 %v2386_v57, %v688_v37 }
 0x144   : > { %v1260_v47 = vsub.s32 0, %v2795_v45  ;;  %v692_v23 = vshrl.u32 %v2386_v57, %v689_v54  ;;  %v695_v15 = vshrl.u32 %v2387_v59, %v689_v54  ;;  %v698_v25 = vshrl.u32 %v2388_v61, %v689_v54 }
 0x145   : > { %v447_v50 = vsel %vm364_vm1, %v446_v18, %v445_v20  ;;  %v2816_v62 = vsel %vm1196_vm12, %v1280_v27, %v1256_v49  ;;  %v697_v2 = vshll.u32 %v2387_v59, %v688_v37  ;;  %vm706_vm13 = vcmp.lt.s32.totalorder %v2797_v58, 1 }
 0x146   : > { %v450_v55 = vsel %vm2721_vm4, %v2447_v21, %v447_v50  ;;  %v2157_v8 = vmin.u32 %v1260_v47, %v2795_v45  ;;  %v693_v3 = vor.u32 %v692_v23, %v691_v10  ;;  %v696_v46 = vor.u32 %v695_v15, %v694_v1 }
 0x147   : > { %2321 = vcosq.f32 %v450_v55  ;;  %v690_v5 = vshrl.u32 %v2385_v53, %v689_v54  ;;  %v699_v7 = vor.u32 %v698_v25, %v697_v2  ;;  %v700_v30 = vshll.u32 %v2388_v61, %v688_v37 }
 0x148   : > { %2323 = vsinq.f32 %v450_v55  ;;  %v1262_v52 = vclz %v2157_v8  ;;  %v701_v19 = vshrl.u32 %v2389_v63, %v689_v54  ;;  %vm2825_vm14 = vcmp.le.f32.partialorder %v1194_v33, 0.7853982 }
 0x149   : > { %v703_v9 = vshll.u32 %v2389_v63, %v688_v37  ;;  %v704_v29 = vshrl.u32 %v2390_v6, %v689_v54  ;;  %vm709_vm15 = vcmp.lt.s32.totalorder %v2797_v58, 4  ;;  %vm461_vm0 = vcmp.eq.s32.totalorder %v2790_v51, 2 }
 0x14a   : > { %v2158_v60 = vadd.s32 4294967294, %v1262_v52  ;;  %v702_v11 = vor.u32 %v701_v19, %v700_v30  ;;  %vm707_vm1 = vcmp.lt.s32.totalorder %v2797_v58, 2  ;;  %vm708_vm2 = vcmp.lt.s32.totalorder %v2797_v58, 3 }
 0x14b   : > { %v711_v33 = vsel %vm709_vm15, %v699_v7, 2102212464  ;;  %vm458_vm3 = vcmp.eq.s32.totalorder %v2790_v51, 0  ;;  %v705_v12 = vor.u32 %v704_v29, %v703_v9  ;;  %v710_v49 = vsel %vm706_vm13, %v690_v5, %v693_v3 }
 0x14c   : > { %vm2159_vm4 = vcmp.lt.s32.totalorder %v2158_v60, 0  ;;  %v714_v13 = vsel %vm706_vm13, %v693_v3, %v696_v46  ;;  %vm457_vm5 = vcmp.lt.s32.totalorder %v2790_v51, 2  ;;  %v712_v48 = vsel %vm708_vm2, %v696_v46, %v711_v33 }
 0x14d   : > { %v1265_v16 = vsel %vm2159_vm4, 0, %v2158_v60  ;;  %v715_v40 = vsel %vm709_vm15, %v702_v11, 920167782  ;;  %v1516_v4 = vadd.s32 1, %v2168_v44  ;;  %vm454_vm6 = vweird.f32 %v2447_v21 }
 0x14e   : > { %v1266_v26 = vsub.s32 32, %v1265_v16  ;;  %v1270_v14 = vsub.s32 4294967266, %v1265_v16  ;;  %v716_v20 = vsel %vm708_vm2, %v699_v7, %v715_v40  ;;  %v718_v37 = vsel %vm706_vm13, %v696_v46, %v699_v7 }
 0x14f   : > { %v1267_v18 = vshll.u32 %v2795_v45, %v1265_v16  ;;  %v717_v27 = vsel %vm707_vm1, %v714_v13, %v716_v20  ;;  %v719_v54 = vsel %vm709_vm15, %v705_v12, 1326507024  ;;  %vm1517_vm7 = vcmp.gt.s32.totalorder %v1516_v4, 0 }
 0x150   : > { %v1268_v47 = vshrl.u32 %v1250_v0, %v1266_v26  ;;  %v1271_v44 = vadd.s32 127, %v1270_v14  ;;  %v720_v50 = vsel %vm708_vm2, %v702_v11, %v719_v54  ;;  %v1518_v10 = vsel %vm1517_vm7, %v1516_v4, 0 }
 0x151   : > { %v2322_v23 = vpop.eup %2321  ;;  %v713_v15 = vsel %vm707_vm1, %v710_v49, %v712_v48  ;;  %v721_v45 = vsel %vm707_vm1, %v718_v37, %v720_v50  ;;  %v2866_v55 = vmul.u32.u64.low %v2800_v36, %v717_v27  ;;  %v2867_v8 = vmul.u32.u64.high %v2800_v36, %v717_v27, %v2866_v55 }
 0x152   : > { %v2324_v1 = vpop.eup %2323  ;;  %v462_v25 = vxor.u32 2147483648, %v2322_v23  ;;  %v1269_v0 = vor.u32 %v1268_v47, %v1267_v18  ;;  %v1272_v2 = vshll.u32 %v1271_v44, 23  ;;  %v1520_v52 = vand.u32 31, %v1518_v10 }
 0x153   : > { %v459_v3 = vxor.u32 2147483648, %v2324_v1  ;;  %v1283_v46 = vsel %vm2825_vm14, 0, %v2816_v62  ;;  %v2874_v5 = vmul.u32.u64.low %v2800_v36, %v721_v45  ;;  %v2875_v7 = vmul.u32.u64.high %v2800_v36, %v721_v45, %v2874_v5 }
 0x154   : > { %v463_v58 = vsel %vm461_vm0, %v462_v25, %v2324_v1  ;;  %v1273_v30 = vor.u32 4788187, %v1272_v2  ;;  %v729_v19 = vmul.u32 %v2800_v36, %v713_v15  ;;  %v1521_v60 = vsub.s32 32, %v1520_v52 }
 0x155   : > { %v460_v9 = vsel %vm458_vm3, %v2322_v23, %v459_v3  ;;  %v1276_v29 = vcvt.s32.f32 %v1269_v0  ;;  %v732_v11 = vadd.s32 1, %v2867_v8  ;;  %v1519_v33 = vshrl.u32 %v1518_v10, 5 }
 0x156   : > { %v464_v62 = vsel %vm457_vm5, %v460_v9, %v463_v58  ;;  %v1274_v12 = vand.u32 2147483647, %v1273_v30  ;;  %v1523_v49 = vshll.u32 %v2385_v53, %v1520_v52  ;;  %v1524_v13 = vshrl.u32 %v2386_v57, %v1521_v60 }
 0x157   : > { %v465_v16 = vsel %vm454_vm6, nan, %v464_v62  ;;  %vm731_vm8 = vc.u32 %v2875_v7, %v2866_v55  ;;  %v1526_v36 = vshll.u32 %v2386_v57, %v1520_v52  ;;  %v1527_v48 = vshrl.u32 %v2387_v59, %v1521_v60 }
 0x158   : > { %2026 = vst [vmem:[%s2745_s20] sm:$0xff] %v465_v16  ;;  %v1277_v40 = vmul.f32 %v1276_v29, %v1274_v12  ;;  %v733_v51 = vsel %vm731_vm8, %v732_v11, %v2867_v8  ;;  %v1525_v4 = vor.u32 %v1524_v13, %v1523_v49  ;;  %v1529_v26 = vshll.u32 %v2387_v59, %v1520_v52 }
 0x159   : > { %v734_v14 = vadd.s32 %v733_v51, %v729_v19  ;;  %v1528_v20 = vor.u32 %v1527_v48, %v1526_v36  ;;  %v1530_v37 = vshrl.u32 %v2388_v61, %v1521_v60  ;;  %v1532_v21 = vshll.u32 %v2388_v61, %v1520_v52 }
 0x15a   : > { %v1278_v18 = vxor.u32 2147483648, %v1277_v40  ;;  %v1533_v27 = vshrl.u32 %v2389_v63, %v1521_v60  ;;  %v1535_v54 = vshll.u32 %v2389_v63, %v1520_v52  ;;  %v1536_v47 = vshrl.u32 %v2390_v6, %v1521_v60 }
 0x15b   : > { %v1287_v44 = vadd.s32 3, %v1283_v46  ;;  %v735_v50 = vadd.s32 536870912, %v734_v14  ;;  %v1531_v10 = vor.u32 %v1530_v37, %v1529_v26  ;;  %vm1538_vm9 = vcmp.lt.s32.totalorder %v1519_v33, 1 }
 0x15c   : > { %v1279_v23 = vsel %vm1196_vm12, %v1278_v18, %v1277_v40  ;;  %v1522_v15 = vshrl.u32 %v2385_v53, %v1521_v60  ;;  %v1534_v45 = vor.u32 %v1533_v27, %v1532_v21  ;;  %v1537_v8 = vor.u32 %v1536_v47, %v1535_v54 }
 0x15d   : > { %v1282_v1 = vsel %vm2825_vm14, %v2449_v22, %v1279_v23  ;;  %v736_v25 = vshrl.u32 %v735_v50, 30  ;;  %vm1539_vm10 = vcmp.lt.s32.totalorder %v1519_v33, 2  ;;  %vm1541_vm11 = vcmp.lt.s32.totalorder %v1519_v33, 4 }
 0x15e   : > { %2325 = vcosq.f32 %v1282_v1  ;;  %v1543_v0 = vsel %vm1541_vm11, %v1531_v10, 2102212464  ;;  %v1546_v2 = vsel %vm1538_vm9, %v1525_v4, %v1528_v20  ;;  %v1547_v52 = vsel %vm1541_vm11, %v1534_v45, 920167782 }
 0x15f   : > { %2327 = vsinq.f32 %v1282_v1  ;;  %v737_v3 = vshll.u32 %v736_v25, 30  ;;  %vm1540_vm13 = vcmp.lt.s32.totalorder %v1519_v33, 3  ;;  %v1542_v46 = vsel %vm1538_vm9, %v1522_v15, %v1525_v4 }
 0x160   : > { %v1548_v5 = vsel %vm1540_vm13, %v1531_v10, %v1547_v52  ;;  %v1550_v58 = vsel %vm1538_vm9, %v1528_v20, %v1531_v10  ;;  %v1551_v30 = vsel %vm1541_vm11, %v1537_v8, 1326507024  ;;  %v1554_v43 = vshll.u32 %v1514_v17, 8 }
 0x161   : > { %v2912_v19 = vsub.s32 %v734_v14, %v737_v3  ;;  %v1544_v60 = vsel %vm1540_vm13, %v1528_v20, %v1543_v0  ;;  %v1549_v9 = vsel %vm1539_vm10, %v1546_v2, %v1548_v5  ;;  %v1552_v29 = vsel %vm1540_vm13, %v1534_v45, %v1551_v30 }
 0x162   : > { %v760_v11 = vsub.s32 4, %v736_v25  ;;  %v1553_v62 = vsel %vm1539_vm10, %v1550_v58, %v1552_v29  ;;  %v2916_v12 = vmul.u32.u64.low %v1554_v43, %v1549_v9  ;;  %v2917_v49 = vmul.u32.u64.high %v1554_v43, %v1549_v9, %v2916_v12 }
 0x163   : > { %v1288_v13 = vand.u32 3, %v1287_v44  ;;  %v740_v16 = vsub.s32 0, %v2912_v19  ;;  %v2921_v36 = vmul.u32.u64.low %v1554_v43, %v1553_v62  ;;  %v2922_v48 = vmul.u32.u64.high %v1554_v43, %v1553_v62, %v2921_v36 }
 0x164   : > { %vm676_vm12 = vcmp.lt.s32.totalorder %v2458_v31, 0  ;;  %v1545_v17 = vsel %vm1539_vm10, %v1542_v46, %v1544_v60  ;;  %v573_v40 = vand.u32 2139095040, %v2462_v35  ;;  %vm1286_vm14 = vweird.f32 %v2449_v22 }
 0x165   : > { %v2137_v34 = vmin.u32 %v740_v16, %v2912_v19  ;;  %v761_v51 = vsel %vm676_vm12, %v760_v11, %v736_v25  ;;  %v1564_v4 = vadd.s32 1, %v2917_v49  ;;  %v570_v26 = vand.u32 2147483647, %v2462_v35 }
 0x166   : > { %vm1289_vm15 = vcmp.lt.s32.totalorder %v1288_v13, 2  ;;  %vm1290_vm0 = vcmp.eq.s32.totalorder %v1288_v13, 0  ;;  %vm2935_vm1 = vcmp.le.f32.partialorder %v674_v39, 0.7853982  ;;  %vm1293_vm2 = vcmp.eq.s32.totalorder %v1288_v13, 2  ;;  %v2944_v39 = vpop.f32.mrb[6].mxu0 }
 0x167   : > { %v742_v33 = vclz %v2137_v34  ;;  %v1561_v37 = vmul.u32 %v1554_v43, %v1545_v17  ;;  %vm1563_vm3 = vc.u32 %v2922_v48, %v2916_v12  ;;  %v574_v21 = vshrl.u32 %v573_v40, 23 }
 0x168   : > { %v2326_v20 = vpop.eup %2325  ;;  %v763_v47 = vsel %vm2935_vm1, 0, %v761_v51  ;;  %v1565_v44 = vsel %vm1563_vm3, %v1564_v4, %v2917_v49  ;;  %v577_v15 = vand.u32 8388607, %v570_v26  ;;  %v730_v8 = vadd.s32 %v2866_v55, %v2875_v7 }
 0x169   : > { %v2328_v18 = vpop.eup %2327  ;;  %v1294_v27 = vxor.u32 2147483648, %v2326_v20  ;;  %v2138_v54 = vadd.s32 4294967294, %v742_v33  ;;  %v1566_v10 = vadd.s32 %v1565_v44, %v1561_v37  ;;  %v2132_v23 = vadd.s32 4294967169, %v574_v21 }
 0x16a   : > { %v1291_v50 = vxor.u32 2147483648, %v2328_v18  ;;  %v1405_v1 = vand.u32 2139095040, %v2465_v42  ;;  %v767_v58 = vadd.s32 3, %v763_v47  ;;  %v578_v60 = vor.u32 8388608, %v577_v15 }
 0x16b   : > { %v1295_v45 = vsel %vm1293_vm2, %v1294_v27, %v2328_v18  ;;  %vm2139_vm4 = vcmp.lt.s32.totalorder %v2138_v54, 0  ;;  %v1567_v2 = vadd.s32 536870912, %v1566_v10  ;;  %v580_v52 = vadd.s32 1, %v2132_v23 }
 0x16c   : > { %v1292_v25 = vsel %vm1290_vm0, %v2326_v20, %v1291_v50  ;;  %v745_v0 = vsel %vm2139_vm4, 0, %v2138_v54  ;;  %v1406_v49 = vshrl.u32 %v1405_v1, 23  ;;  %v2957_v36 = vand.u32 3, %v767_v58 }
 0x16d   : > { %v1296_v3 = vsel %vm1289_vm15, %v1292_v25, %v1295_v45  ;;  %v746_v46 = vsub.s32 32, %v745_v0  ;;  %v750_v5 = vsub.s32 4294967266, %v745_v0  ;;  %v1568_v43 = vshrl.u32 %v1567_v2, 30 }
 0x16e   : > { %v1297_v30 = vsel %vm1286_vm14, nan, %v1296_v3  ;;  %vm581_vm5 = vcmp.gt.s32.totalorder %v580_v52, 0  ;;  %v747_v55 = vshll.u32 %v2912_v19, %v745_v0  ;;  %vm1508_vm6 = vcmp.lt.s32.totalorder %v2460_v32, 0 }
 0x16f   : > { %2034 = vst [vmem:[%s2745_s20 + $0x40] sm:$0xff] %v1297_v30  ;;  %v748_v7 = vshrl.u32 %v730_v8, %v746_v46  ;;  %v751_v9 = vadd.s32 127, %v750_v5  ;;  %v582_v29 = vsel %vm581_vm5, %v580_v52, 0  ;;  %v1569_v11 = vshll.u32 %v1568_v43, 30 }
 0x170   : > { %v584_v62 = vand.u32 31, %v582_v29  ;;  %v1562_v40 = vadd.s32 %v2916_v12, %v2922_v48  ;;  %v1592_v19 = vsub.s32 4, %v1568_v43  ;;  %v2964_v51 = vshll.u32 %v578_v60, 8 }
 0x171   : > { %v749_v13 = vor.u32 %v748_v7, %v747_v55  ;;  %v752_v16 = vshll.u32 %v751_v9, 23  ;;  %v2960_v22 = vsub.s32 %v1566_v10, %v1569_v11  ;;  %v583_v33 = vshrl.u32 %v582_v29, 5 }
 0x172   : > { %v585_v34 = vsub.s32 32, %v584_v62  ;;  %v2164_v37 = vadd.s32 4294967169, %v1406_v49  ;;  %v587_v44 = vshll.u32 %v2385_v53, %v584_v62  ;;  %v590_v12 = vshll.u32 %v2386_v57, %v584_v62 }
 0x173   : > { %v753_v17 = vor.u32 4788187, %v752_v16  ;;  %v1572_v4 = vsub.s32 0, %v2960_v22  ;;  %v756_v18 = vcvt.s32.f32 %v749_v13  ;;  %v593_v48 = vshll.u32 %v2387_v59, %v584_v62 }
 0x174   : > { %v588_v20 = vshrl.u32 %v2386_v57, %v585_v34  ;;  %v591_v27 = vshrl.u32 %v2387_v59, %v585_v34  ;;  %v594_v54 = vshrl.u32 %v2388_v61, %v585_v34  ;;  %v2976_v10 = vsel %vm1508_vm6, %v1592_v19, %v1568_v43 }
 0x175   : > { %v754_v21 = vand.u32 2147483647, %v753_v17  ;;  %v2169_v47 = vmin.u32 %v1572_v4, %v2960_v22  ;;  %v596_v23 = vshll.u32 %v2388_v61, %v584_v62  ;;  %v597_v15 = vshrl.u32 %v2389_v63, %v585_v34  ;;  %v2997_v17 = vpop.f32.mrb[6].mxu1 }
 0x176   : > { %v589_v8 = vor.u32 %v588_v20, %v587_v44  ;;  %v592_v1 = vor.u32 %v591_v27, %v590_v12  ;;  %v595_v25 = vor.u32 %v594_v54, %v593_v48  ;;  %v599_v52 = vshll.u32 %v2389_v63, %v584_v62 }
 0x177   : > { %v757_v50 = vmul.f32 %v756_v18, %v754_v21  ;;  %v1574_v45 = vclz %v2169_v47  ;;  %v598_v2 = vor.u32 %v597_v15, %v596_v23  ;;  %v600_v3 = vshrl.u32 %v2390_v6, %v585_v34 }
 0x178   : > { %v586_v5 = vshrl.u32 %v2385_v53, %v585_v34  ;;  %vm602_vm7 = vcmp.lt.s32.totalorder %v583_v33, 1  ;;  %vm603_vm8 = vcmp.lt.s32.totalorder %v583_v33, 2  ;;  %vm604_vm9 = vcmp.lt.s32.totalorder %v583_v33, 3 }
 0x179   : > { %v758_v0 = vxor.u32 2147483648, %v757_v50  ;;  %v2170_v46 = vadd.s32 4294967294, %v1574_v45  ;;  %v601_v30 = vor.u32 %v600_v3, %v599_v52  ;;  %vm605_vm10 = vcmp.lt.s32.totalorder %v583_v33, 4 }
 0x17a   : > { %v606_v60 = vsel %vm602_vm7, %v586_v5, %v589_v8  ;;  %v607_v55 = vsel %vm605_vm10, %v595_v25, 2102212464  ;;  %v610_v9 = vsel %vm602_vm7, %v589_v8, %v592_v1  ;;  %v611_v29 = vsel %vm605_vm10, %v598_v2, 920167782 }
 0x17b   : > { %v759_v58 = vsel %vm676_vm12, %v758_v0, %v757_v50  ;;  %vm2171_vm11 = vcmp.lt.s32.totalorder %v2170_v46, 0  ;;  %v608_v49 = vsel %vm604_vm9, %v592_v1, %v607_v55  ;;  %v612_v14 = vsel %vm604_vm9, %v595_v25, %v611_v29 }
 0x17c   : > { %v762_v43 = vsel %vm2935_vm1, %v2458_v31, %v759_v58  ;;  %v1577_v7 = vsel %vm2171_vm11, 0, %v2170_v46  ;;  %v614_v16 = vsel %vm602_vm7, %v592_v1, %v595_v25  ;;  %v615_v34 = vsel %vm605_vm10, %v601_v30, 1326507024 }
 0x17d   : > { %2329 = vcosq.f32 %v762_v43  ;;  %v1578_v11 = vsub.s32 32, %v1577_v7  ;;  %v1582_v62 = vsub.s32 4294967266, %v1577_v7  ;;  %v1579_v13 = vshll.u32 %v2960_v22, %v1577_v7 }
 0x17e   : > { %2331 = vsinq.f32 %v762_v43  ;;  %v613_v20 = vsel %vm603_vm8, %v610_v9, %v612_v14  ;;  %v616_v21 = vsel %vm604_vm9, %v598_v2, %v615_v34  ;;  %v609_v18 = vsel %vm603_vm8, %v606_v60, %v608_v49 }
 0x17f   : > { %v1580_v19 = vshrl.u32 %v1562_v40, %v1578_v11  ;;  %v1583_v4 = vadd.s32 127, %v1582_v62  ;;  %v617_v27 = vsel %vm603_vm8, %v614_v16, %v616_v21  ;;  %vm3014_vm13 = vcmp.le.f32.partialorder %v1506_v41, 0.7853982 }
 0x180   : > { %v3004_v22 = vmul.u32.u64.low %v2964_v51, %v613_v20  ;;  %v3005_v54 = vmul.u32.u64.high %v2964_v51, %v613_v20, %v3004_v22  ;;  %v3009_v12 = vmul.u32.u64.low %v2964_v51, %v617_v27  ;;  %v3010_v48 = vmul.u32.u64.high %v2964_v51, %v617_v27, %v3009_v12 }
 0x181   : > { %v1581_v47 = vor.u32 %v1580_v19, %v1579_v13  ;;  %v1584_v44 = vshll.u32 %v1583_v4, 23  ;;  %v1412_v50 = vadd.s32 1, %v2164_v37  ;;  %vm766_vm12 = vweird.f32 %v2458_v31 }
 0x182   : > { %vm769_vm14 = vcmp.lt.s32.totalorder %v2957_v36, 2  ;;  %v1402_v23 = vand.u32 2147483647, %v2465_v42  ;;  %v1595_v15 = vsel %vm3014_vm13, 0, %v2976_v10  ;;  %v625_v45 = vmul.u32 %v2964_v51, %v609_v18 }
 0x183   : > { %v1585_v33 = vor.u32 4788187, %v1584_v44  ;;  %v628_v8 = vadd.s32 1, %v3005_v54  ;;  %vm1413_vm15 = vcmp.gt.s32.totalorder %v1412_v50, 0  ;;  %v1588_v1 = vcvt.s32.f32 %v1581_v47 }
 0x184   : > { %vm627_vm0 = vc.u32 %v3010_v48, %v3004_v22  ;;  %v1414_v37 = vsel %vm1413_vm15, %v1412_v50, 0  ;;  %vm770_vm1 = vcmp.eq.s32.totalorder %v2957_v36, 0  ;;  %vm773_vm2 = vcmp.eq.s32.totalorder %v2957_v36, 2 }
 0x185   : > { %v1586_v41 = vand.u32 2147483647, %v1585_v33  ;;  %v629_v0 = vsel %vm627_vm0, %v628_v8, %v3005_v54  ;;  %v1416_v2 = vand.u32 31, %v1414_v37  ;;  %v1409_v46 = vand.u32 8388607, %v1402_v23 }
 0x186   : > { %v630_v3 = vadd.s32 %v629_v0, %v625_v45  ;;  %v1599_v58 = vadd.s32 3, %v1595_v15  ;;  %v885_v43 = vand.u32 2139095040, %v2545_v38  ;;  %v1415_v20 = vshrl.u32 %v1414_v37, 5 }
 0x187   : > { %v2330_v25 = vpop.eup %2329  ;;  %v1589_v51 = vmul.f32 %v1588_v1, %v1586_v41  ;;  %v1417_v30 = vsub.s32 32, %v1416_v2  ;;  %v1419_v9 = vshll.u32 %v2385_v53, %v1416_v2  ;;  %v1422_v62 = vshll.u32 %v2386_v57, %v1416_v2 }
 0x188   : > { %v2332_v10 = vpop.eup %2331  ;;  %v774_v52 = vxor.u32 2147483648, %v2330_v25  ;;  %v631_v7 = vadd.s32 536870912, %v630_v3  ;;  %v1425_v21 = vshll.u32 %v2387_v59, %v1416_v2  ;;  %v1428_v47 = vshll.u32 %v2388_v61, %v1416_v2 }
 0x189   : > { %v771_v5 = vxor.u32 2147483648, %v2332_v10  ;;  %v1590_v55 = vxor.u32 2147483648, %v1589_v51  ;;  %v1420_v11 = vshrl.u32 %v2386_v57, %v1417_v30  ;;  %v1423_v49 = vshrl.u32 %v2387_v59, %v1417_v30 }
 0x18a   : > { %v775_v60 = vsel %vm773_vm2, %v774_v52, %v2332_v10  ;;  %v3044_v16 = vshrl.u32 %v631_v7, 30  ;;  %v1426_v34 = vshrl.u32 %v2388_v61, %v1417_v30  ;;  %v1429_v31 = vshrl.u32 %v2389_v63, %v1417_v30 }
 0x18b   : > { %v772_v29 = vsel %vm770_vm1, %v2330_v25, %v771_v5  ;;  %v1591_v14 = vsel %vm1508_vm6, %v1590_v55, %v1589_v51  ;;  %v1421_v18 = vor.u32 %v1420_v11, %v1419_v9  ;;  %v1424_v27 = vor.u32 %v1423_v49, %v1422_v62  ;;  %v3072_v55 = vpop.f32.mrb[7].mxu0 }
 0x18c   : > { %v776_v13 = vsel %vm769_vm14, %v772_v29, %v775_v60  ;;  %v1594_v4 = vsel %vm3014_vm13, %v2460_v32, %v1591_v14  ;;  %v633_v36 = vshll.u32 %v3044_v16, 30  ;;  %v1427_v54 = vor.u32 %v1426_v34, %v1425_v21 }
 0x18d   : > { %v777_v19 = vsel %vm766_vm12, nan, %v776_v13  ;;  %2333 = vcosq.f32 %v1594_v4  ;;  %v1600_v44 = vand.u32 3, %v1599_v58  ;;  %v1431_v40 = vshll.u32 %v2389_v63, %v1416_v2 }
 0x18e   : > { %2029 = vst [vmem:[%s2745_s20 + $0x18] sm:$0xff] %v777_v19  ;;  %2335 = vsinq.f32 %v1594_v4  ;;  %v3057_v12 = vsub.s32 %v630_v3, %v633_v36  ;;  %v1432_v50 = vshrl.u32 %v2390_v6, %v1417_v30  ;;  %v1410_v33 = vor.u32 8388608, %v1409_v46 }
 0x18f   : > { %v1430_v15 = vor.u32 %v1429_v31, %v1428_v47  ;;  %v882_v45 = vand.u32 2147483647, %v2545_v38  ;;  %v886_v8 = vshrl.u32 %v885_v43, 23  ;;  %vm1434_vm3 = vcmp.lt.s32.totalorder %v1415_v20, 1 }
 0x190   : > { %v636_v41 = vsub.s32 0, %v3057_v12  ;;  %v1433_v1 = vor.u32 %v1432_v50, %v1431_v40  ;;  %vm1437_vm4 = vcmp.lt.s32.totalorder %v1415_v20, 4  ;;  %vm1436_vm5 = vcmp.lt.s32.totalorder %v1415_v20, 3 }
 0x191   : > { %v1439_v37 = vsel %vm1437_vm4, %v1427_v54, 2102212464  ;;  %v1442_v25 = vsel %vm1434_vm3, %v1421_v18, %v1424_v27  ;;  %v1443_v0 = vsel %vm1437_vm4, %v1430_v15, 920167782  ;;  %vm1601_vm6 = vcmp.lt.s32.totalorder %v1600_v44, 2 }
 0x192   : > { %v2133_v2 = vmin.u32 %v636_v41, %v3057_v12  ;;  %v1418_v10 = vshrl.u32 %v2385_v53, %v1417_v30  ;;  %vm1435_vm7 = vcmp.lt.s32.totalorder %v1415_v20, 2  ;;  %v1444_v52 = vsel %vm1436_vm5, %v1427_v54, %v1443_v0 }
 0x193   : > { %vm1598_vm8 = vweird.f32 %v2460_v32  ;;  %v1445_v51 = vsel %vm1435_vm7, %v1442_v25, %v1444_v52  ;;  %v1446_v3 = vsel %vm1434_vm3, %v1424_v27, %v1427_v54  ;;  %v1447_v46 = vsel %vm1437_vm4, %v1433_v1, 1326507024 }
 0x194   : > { %v1450_v5 = vshll.u32 %v1410_v33, 8  ;;  %vm1602_vm9 = vcmp.eq.s32.totalorder %v1600_v44, 0  ;;  %v638_v58 = vclz %v2133_v2  ;;  %v1438_v43 = vsel %vm1434_vm3, %v1418_v10, %v1421_v18 }
 0x195   : > { %v1440_v60 = vsel %vm1436_vm5, %v1424_v27, %v1439_v37  ;;  %vm1605_vm10 = vcmp.eq.s32.totalorder %v1600_v44, 2  ;;  %v1448_v30 = vsel %vm1436_vm5, %v1430_v15, %v1447_v46  ;;  %v2144_v49 = vadd.s32 4294967169, %v886_v8 }
 0x196   : > { %v3075_v7 = vmul.u32.u64.low %v1450_v5, %v1445_v51  ;;  %v3076_v9 = vmul.u32.u64.high %v1450_v5, %v1445_v51, %v3075_v7  ;;  %v2134_v11 = vadd.s32 4294967294, %v638_v58  ;;  %v1449_v62 = vsel %vm1435_vm7, %v1446_v3, %v1448_v30 }
 0x197   : > { %v2334_v29 = vpop.eup %2333  ;;  %v3082_v13 = vand.u32 8388607, %v882_v45  ;;  %v1441_v19 = vsel %vm1435_vm7, %v1438_v43, %v1440_v60  ;;  %v3085_v4 = vmul.u32.u64.low %v1450_v5, %v1449_v62  ;;  %v3086_v21 = vmul.u32.u64.high %v1450_v5, %v1449_v62, %v3085_v4 }
 0x198   : > { %v2336_v14 = vpop.eup %2335  ;;  %v1606_v34 = vxor.u32 2147483648, %v2334_v29  ;;  %v626_v18 = vadd.s32 %v3004_v22, %v3010_v48  ;;  %vm2135_vm11 = vcmp.lt.s32.totalorder %v2134_v11, 0  ;;  %v892_v27 = vadd.s32 1, %v2144_v49 }
 0x199   : > { %v1603_v36 = vxor.u32 2147483648, %v2336_v14  ;;  %v641_v47 = vsel %vm2135_vm11, 0, %v2134_v11  ;;  %v656_v31 = vsub.s32 4, %v3044_v16  ;;  %v1460_v40 = vadd.s32 1, %v3076_v9 }
 0x19a   : > { %v1607_v54 = vsel %vm1605_vm10, %v1606_v34, %v2336_v14  ;;  %v642_v50 = vsub.s32 32, %v641_v47  ;;  %v646_v33 = vsub.s32 4294967266, %v641_v47  ;;  %v1457_v15 = vmul.u32 %v1450_v5, %v1441_v19 }
 0x19b   : > { %v1604_v20 = vsel %vm1602_vm9, %v2334_v29, %v1603_v36  ;;  %v643_v41 = vshll.u32 %v3057_v12, %v641_v47  ;;  %vm1459_vm13 = vc.u32 %v3086_v21, %v3075_v7  ;;  %vm893_vm12 = vcmp.gt.s32.totalorder %v892_v27, 0 }
 0x19c   : > { %v1608_v8 = vsel %vm1601_vm6, %v1604_v20, %v1607_v54  ;;  %v644_v48 = vshrl.u32 %v626_v18, %v642_v50  ;;  %v647_v1 = vadd.s32 127, %v646_v33  ;;  %v1461_v37 = vsel %vm1459_vm13, %v1460_v40, %v3076_v9 }
 0x19d   : > { %v1609_v22 = vsel %vm1598_vm8, nan, %v1608_v8  ;;  %vm572_vm14 = vcmp.lt.s32.totalorder %v2462_v35, 0  ;;  %v1462_v25 = vadd.s32 %v1461_v37, %v1457_v15  ;;  %v894_v0 = vsel %vm893_vm12, %v892_v27, 0 }
 0x19e   : > { %2037 = vst [vmem:[%s2745_s20 + $0x58] sm:$0xff] %v1609_v22  ;;  %v645_v44 = vor.u32 %v644_v48, %v643_v41  ;;  %v648_v2 = vshll.u32 %v647_v1, 23  ;;  %v657_v12 = vsel %vm572_vm14, %v656_v31, %v3044_v16  ;;  %v896_v10 = vand.u32 31, %v894_v0 }
 0x19f   : > { %v1463_v52 = vadd.s32 536870912, %v1462_v25  ;;  %vm3108_vm15 = vcmp.le.f32.partialorder %v570_v26, 0.7853982  ;;  %v890_v3 = vor.u32 8388608, %v3082_v13  ;;  %v1717_v60 = vand.u32 2139095040, %v2641_v28 }
 0x1a0   : > { %v649_v51 = vor.u32 4788187, %v648_v2  ;;  %v897_v46 = vsub.s32 32, %v896_v10  ;;  %v652_v5 = vcvt.s32.f32 %v645_v44  ;;  %v659_v58 = vsel %vm3108_vm15, 0, %v657_v12 }
 0x1a1   : > { %v1464_v43 = vshrl.u32 %v1463_v52, 30  ;;  %vm1404_vm0 = vcmp.lt.s32.totalorder %v2465_v42, 0  ;;  %v899_v30 = vshll.u32 %v2385_v53, %v896_v10  ;;  %v902_v11 = vshll.u32 %v2386_v57, %v896_v10 }
 0x1a2   : > { %v650_v16 = vand.u32 2147483647, %v649_v51  ;;  %v900_v26 = vshrl.u32 %v2386_v57, %v897_v46  ;;  %v903_v9 = vshrl.u32 %v2387_v59, %v897_v46  ;;  %v906_v62 = vshrl.u32 %v2388_v61, %v897_v46 }
 0x1a3   : > { %v1465_v29 = vshll.u32 %v1464_v43, 30  ;;  %v909_v49 = vshrl.u32 %v2389_v63, %v897_v46  ;;  %v895_v14 = vshrl.u32 %v894_v0, 5  ;;  %v905_v34 = vshll.u32 %v2387_v59, %v896_v10 }
 0x1a4   : > { %v653_v13 = vmul.f32 %v652_v5, %v650_v16  ;;  %v908_v19 = vshll.u32 %v2388_v61, %v896_v10  ;;  %v663_v4 = vadd.s32 3, %v659_v58  ;;  %v901_v18 = vor.u32 %v900_v26, %v899_v30 }
 0x1a5   : > { %v3125_v36 = vsub.s32 %v1462_v25, %v1465_v29  ;;  %v904_v27 = vor.u32 %v903_v9, %v902_v11  ;;  %v907_v47 = vor.u32 %v906_v62, %v905_v34  ;;  %v912_v40 = vshrl.u32 %v2390_v6, %v897_v46 }
 0x1a6   : > { %v654_v54 = vxor.u32 2147483648, %v653_v13  ;;  %v910_v31 = vor.u32 %v909_v49, %v908_v19  ;;  %v1488_v50 = vsub.s32 4, %v1464_v43  ;;  %v911_v33 = vshll.u32 %v2389_v63, %v896_v10 }
 0x1a7   : > { %v1468_v20 = vsub.s32 0, %v3125_v36  ;;  %v3130_v15 = vshll.u32 %v890_v3, 8  ;;  %v898_v41 = vshrl.u32 %v2385_v53, %v897_v46  ;;  %vm914_vm1 = vcmp.lt.s32.totalorder %v895_v14, 1 }
 0x1a8   : > { %v655_v8 = vsel %vm572_vm14, %v654_v54, %v653_v13  ;;  %v1718_v22 = vshrl.u32 %v1717_v60, 23  ;;  %v913_v37 = vor.u32 %v912_v40, %v911_v33  ;;  %vm917_vm2 = vcmp.lt.s32.totalorder %v895_v14, 4 }
 0x1a9   : > { %v658_v48 = vsel %vm3108_vm15, %v2462_v35, %v655_v8  ;;  %v2165_v1 = vmin.u32 %v1468_v20, %v3125_v36  ;;  %v919_v25 = vsel %vm917_vm2, %v907_v47, 2102212464  ;;  %v922_v0 = vsel %vm914_vm1, %v901_v18, %v904_v27 }
 0x1aa   : > { %2337 = vcosq.f32 %v658_v48  ;;  %v923_v44 = vsel %vm917_vm2, %v910_v31, 920167782  ;;  %v1489_v12 = vsel %vm1404_vm0, %v1488_v50, %v1464_v43  ;;  %vm916_vm3 = vcmp.lt.s32.totalorder %v895_v14, 3 }
 0x1ab   : > { %2339 = vsinq.f32 %v658_v48  ;;  %v1470_v2 = vclz %v2165_v1  ;;  %vm915_vm4 = vcmp.lt.s32.totalorder %v895_v14, 2  ;;  %v918_v10 = vsel %vm914_vm1, %v898_v41, %v901_v18  ;;  %v3170_v18 = vpop.f32.mrb[7].mxu1 }
 0x1ac   : > { %v924_v52 = vsel %vm916_vm3, %v907_v47, %v923_v44  ;;  %v926_v32 = vsel %vm914_vm1, %v904_v27, %v907_v47  ;;  %v920_v3 = vsel %vm916_vm3, %v904_v27, %v919_v25  ;;  %v927_v5 = vsel %vm917_vm2, %v913_v37, 1326507024 }
 0x1ad   : > { %v2166_v51 = vadd.s32 4294967294, %v1470_v2  ;;  %v925_v46 = vsel %vm915_vm4, %v922_v0, %v924_v52  ;;  %v928_v58 = vsel %vm916_vm3, %v910_v31, %v927_v5  ;;  %v2176_v43 = vadd.s32 4294967169, %v1718_v22 }
 0x1ae   : > { %v3149_v60 = vmul.u32.u64.low %v3130_v15, %v925_v46  ;;  %v3150_v16 = vmul.u32.u64.high %v3130_v15, %v925_v46, %v3149_v60  ;;  %vm3155_vm5 = vcmp.le.f32.partialorder %v1402_v23, 0.7853982  ;;  %v1458_v26 = vadd.s32 %v3075_v7, %v3086_v21 }
 0x1af   : > { %vm2167_vm6 = vcmp.lt.s32.totalorder %v2166_v51, 0  ;;  %v929_v9 = vsel %vm915_vm4, %v926_v32, %v928_v58  ;;  %v1724_v49 = vadd.s32 1, %v2176_v43  ;;  %vm662_vm7 = vweird.f32 %v2462_v35 }
 0x1b0   : > { %v1473_v29 = vsel %vm2167_vm6, 0, %v2166_v51  ;;  %v3163_v11 = vmul.u32.u64.low %v3130_v15, %v929_v9  ;;  %v3164_v62 = vmul.u32.u64.high %v3130_v15, %v929_v9, %v3163_v11  ;;  %v1491_v23 = vsel %vm3155_vm5, 0, %v1489_v12 }
 0x1b1   : > { %v1474_v13 = vsub.s32 32, %v1473_v29  ;;  %v1478_v34 = vsub.s32 4294967266, %v1473_v29  ;;  %v921_v19 = vsel %vm915_vm4, %v918_v10, %v920_v3  ;;  %v664_v7 = vand.u32 3, %v663_v4 }
 0x1b2   : > { %v940_v21 = vadd.s32 1, %v3150_v16  ;;  %v1714_v27 = vand.u32 2147483647, %v2641_v28  ;;  %vm1725_vm8 = vcmp.gt.s32.totalorder %v1724_v49, 0  ;;  %v1475_v54 = vshll.u32 %v3125_v36, %v1473_v29 }
 0x1b3   : > { %v1476_v47 = vshrl.u32 %v1458_v26, %v1474_v13  ;;  %v1479_v31 = vadd.s32 127, %v1478_v34  ;;  %v1726_v40 = vsel %vm1725_vm8, %v1724_v49, 0  ;;  %v1495_v50 = vadd.s32 3, %v1491_v23 }
 0x1b4   : > { %v2338_v20 = vpop.eup %2337  ;;  %v937_v33 = vmul.u32 %v3130_v15, %v921_v19  ;;  %vm939_vm9 = vc.u32 %v3164_v62, %v3149_v60  ;;  %v1728_v14 = vand.u32 31, %v1726_v40  ;;  %vm669_vm10 = vcmp.eq.s32.totalorder %v664_v7, 2 }
 0x1b5   : > { %v2340_v8 = vpop.eup %2339  ;;  %v670_v4 = vxor.u32 2147483648, %v2338_v20  ;;  %v1477_v41 = vor.u32 %v1476_v47, %v1475_v54  ;;  %v1480_v22 = vshll.u32 %v1479_v31, 23  ;;  %v941_v48 = vsel %vm939_vm9, %v940_v21, %v3150_v16 }
 0x1b6   : > { %v667_v1 = vxor.u32 2147483648, %v2340_v8  ;;  %v942_v36 = vadd.s32 %v941_v48, %v937_v33  ;;  %v1729_v37 = vsub.s32 32, %v1728_v14  ;;  %vm665_vm11 = vcmp.lt.s32.totalorder %v664_v7, 2 }
 0x1b7   : > { %vm666_vm13 = vcmp.eq.s32.totalorder %v664_v7, 0  ;;  %v671_v25 = vsel %vm669_vm10, %v670_v4, %v2340_v8  ;;  %v1481_v0 = vor.u32 4788187, %v1480_v22  ;;  %v3179_v44 = vand.u32 3, %v1495_v50 }
 0x1b8   : > { %v668_v15 = vsel %vm666_vm13, %v2338_v20, %v667_v1  ;;  %v943_v2 = vadd.s32 536870912, %v942_v36  ;;  %v1721_v12 = vand.u32 8388607, %v1714_v27  ;;  %v1484_v32 = vcvt.s32.f32 %v1477_v41 }
 0x1b9   : > { %v672_v10 = vsel %vm665_vm11, %v668_v15, %v671_v25  ;;  %v1482_v52 = vand.u32 2147483647, %v1481_v0  ;;  %v1732_v51 = vshrl.u32 %v2386_v57, %v1729_v37  ;;  %v1735_v5 = vshrl.u32 %v2387_v59, %v1729_v37 }
 0x1ba   : > { %v673_v3 = vsel %vm662_vm7, nan, %v672_v10  ;;  %v944_v46 = vshrl.u32 %v943_v2, 30  ;;  %v1738_v58 = vshrl.u32 %v2388_v61, %v1729_v37  ;;  %v1727_v43 = vshrl.u32 %v1726_v40, 5 }
 0x1bb   : > { %2028 = vst [vmem:[%s2745_s20 + $0x10] sm:$0xff] %v673_v3  ;;  %v1485_v16 = vmul.f32 %v1484_v32, %v1482_v52  ;;  %v1740_v26 = vshll.u32 %v2388_v61, %v1728_v14  ;;  %v1741_v9 = vshrl.u32 %v2389_v63, %v1729_v37  ;;  %v1731_v11 = vshll.u32 %v2385_v53, %v1728_v14 }
 0x1bc   : > { %v945_v29 = vshll.u32 %v944_v46, 30  ;;  %v1734_v49 = vshll.u32 %v2386_v57, %v1728_v14  ;;  %v1737_v35 = vshll.u32 %v2387_v59, %v1728_v14  ;;  %v1743_v23 = vshll.u32 %v2389_v63, %v1728_v14 }
 0x1bd   : > { %v1486_v13 = vxor.u32 2147483648, %v1485_v16  ;;  %v1742_v34 = vor.u32 %v1741_v9, %v1740_v26  ;;  %v1744_v19 = vshrl.u32 %v2390_v6, %v1729_v37  ;;  %vm884_vm12 = vcmp.lt.s32.totalorder %v2545_v38, 0 }
 0x1be   : > { %v3197_v7 = vsub.s32 %v942_v36, %v945_v29  ;;  %v1733_v21 = vor.u32 %v1732_v51, %v1731_v11  ;;  %v1736_v54 = vor.u32 %v1735_v5, %v1734_v49  ;;  %v1739_v47 = vor.u32 %v1738_v58, %v1737_v35 }
 0x1bf   : > { %v1487_v31 = vsel %vm1404_vm0, %v1486_v13, %v1485_v16  ;;  %v1722_v40 = vor.u32 8388608, %v1721_v12  ;;  %v1745_v20 = vor.u32 %v1744_v19, %v1743_v23  ;;  %v781_v50 = vand.u32 2139095040, %v2752_v24 }
 0x1c0   : > { %v1490_v33 = vsel %vm3155_vm5, %v2465_v42, %v1487_v31  ;;  %v948_v14 = vsub.s32 0, %v3197_v7  ;;  %v1730_v8 = vshrl.u32 %v2385_v53, %v1729_v37  ;;  %vm1749_vm14 = vcmp.lt.s32.totalorder %v1727_v43, 4 }
 0x1c1   : > { %2341 = vcosq.f32 %v1490_v33  ;;  %vm3209_vm15 = vcmp.le.f32.partialorder %v882_v45, 0.7853982  ;;  %vm1746_vm0 = vcmp.lt.s32.totalorder %v1727_v43, 1  ;;  %vm1748_vm1 = vcmp.lt.s32.totalorder %v1727_v43, 3 }
 0x1c2   : > { %v1755_v41 = vsel %vm1749_vm14, %v1742_v34, 920167782  ;;  %2343 = vsinq.f32 %v1490_v33  ;;  %v2145_v22 = vmin.u32 %v948_v14, %v3197_v7  ;;  %v1751_v30 = vsel %vm1749_vm14, %v1739_v47, 2102212464 }
 0x1c3   : > { %v1754_v48 = vsel %vm1746_vm0, %v1733_v21, %v1736_v54  ;;  %v968_v1 = vsub.s32 4, %v944_v46  ;;  %v1756_v36 = vsel %vm1748_vm1, %v1739_v47, %v1755_v41  ;;  %v1758_v37 = vsel %vm1746_vm0, %v1736_v54, %v1739_v47 }
 0x1c4   : > { %v1759_v25 = vsel %vm1749_vm14, %v1745_v20, 1326507024  ;;  %v950_v0 = vclz %v2145_v22  ;;  %vm1747_vm2 = vcmp.lt.s32.totalorder %v1727_v43, 2  ;;  %v1750_v15 = vsel %vm1746_vm0, %v1730_v8, %v1733_v21 }
 0x1c5   : > { %v1762_v45 = vshll.u32 %v1722_v40, 8  ;;  %v1752_v2 = vsel %vm1748_vm1, %v1736_v54, %v1751_v30  ;;  %v1757_v12 = vsel %vm1747_vm2, %v1754_v48, %v1756_v36  ;;  %v1760_v10 = vsel %vm1748_vm1, %v1742_v34, %v1759_v25 }
 0x1c6   : > { %v782_v52 = vshrl.u32 %v781_v50, 23  ;;  %v2146_v32 = vadd.s32 4294967294, %v950_v0  ;;  %v1761_v51 = vsel %vm1747_vm2, %v1758_v37, %v1760_v10  ;;  %v969_v58 = vsel %vm884_vm12, %v968_v1, %v944_v46 }
 0x1c7   : > { %v3219_v3 = vmul.u32.u64.low %v1762_v45, %v1757_v12  ;;  %v3220_v5 = vmul.u32.u64.high %v1762_v45, %v1757_v12, %v3219_v3  ;;  %v3225_v16 = vmul.u32.u64.low %v1762_v45, %v1761_v51  ;;  %v3226_v26 = vmul.u32.u64.high %v1762_v45, %v1761_v51, %v3225_v16 }
 0x1c8   : > { %v2140_v9 = vadd.s32 4294967169, %v782_v52  ;;  %vm1498_vm3 = vcmp.eq.s32.totalorder %v3179_v44, 0  ;;  %vm1501_vm4 = vcmp.eq.s32.totalorder %v3179_v44, 2  ;;  %vm2147_vm5 = vcmp.lt.s32.totalorder %v2146_v32, 0 }
 0x1c9   : > { %v1753_v29 = vsel %vm1747_vm2, %v1750_v15, %v1752_v2  ;;  %v938_v11 = vadd.s32 %v3149_v60, %v3164_v62  ;;  %v953_v49 = vsel %vm2147_vm5, 0, %v2146_v32  ;;  %v778_v35 = vand.u32 2147483647, %v2752_v24 }
 0x1ca   : > { %v788_v13 = vadd.s32 1, %v2140_v9  ;;  %v954_v34 = vsub.s32 32, %v953_v49  ;;  %v958_v46 = vsub.s32 4294967266, %v953_v49  ;;  %v971_v23 = vsel %vm3209_vm15, 0, %v969_v58 }
 0x1cb   : > { %v1772_v19 = vadd.s32 1, %v3220_v5  ;;  %v2342_v21 = vpop.eup %2341  ;;  %v955_v54 = vshll.u32 %v3197_v7, %v953_v49  ;;  %v1769_v47 = vmul.u32 %v1762_v45, %v1753_v29  ;;  %vm1771_vm6 = vc.u32 %v3226_v26, %v3219_v3 }
 0x1cc   : > { %vm789_vm7 = vcmp.gt.s32.totalorder %v788_v13, 0  ;;  %v2344_v60 = vpop.eup %2343  ;;  %v1502_v62 = vxor.u32 2147483648, %v2342_v21  ;;  %v956_v43 = vshrl.u32 %v938_v11, %v954_v34  ;;  %v959_v31 = vadd.s32 127, %v958_v46 }
 0x1cd   : > { %v1773_v40 = vsel %vm1771_vm6, %v1772_v19, %v3220_v5  ;;  %v1499_v20 = vxor.u32 2147483648, %v2344_v60  ;;  %v975_v50 = vadd.s32 3, %v971_v23  ;;  %v790_v14 = vsel %vm789_vm7, %v788_v13, 0 }
 0x1ce   : > { %v1774_v33 = vadd.s32 %v1773_v40, %v1769_v47  ;;  %v1503_v8 = vsel %vm1501_vm4, %v1502_v62, %v2344_v60  ;;  %v957_v7 = vor.u32 %v956_v43, %v955_v54  ;;  %v960_v41 = vshll.u32 %v959_v31, 23 }
 0x1cf   : > { %v785_v22 = vand.u32 8388607, %v778_v35  ;;  %vm1497_vm8 = vcmp.lt.s32.totalorder %v3179_v44, 2  ;;  %v1500_v30 = vsel %vm1498_vm3, %v2342_v21, %v1499_v20  ;;  %v792_v1 = vand.u32 31, %v790_v14 }
 0x1d0   : > { %v1775_v48 = vadd.s32 536870912, %v1774_v33  ;;  %vm1494_vm9 = vweird.f32 %v2465_v42  ;;  %v1504_v36 = vsel %vm1497_vm8, %v1500_v30, %v1503_v8  ;;  %v961_v37 = vor.u32 4788187, %v960_v41 }
 0x1d1   : > { %v1505_v25 = vsel %vm1494_vm9, nan, %v1504_v36  ;;  %v793_v15 = vsub.s32 32, %v792_v1  ;;  %v964_v2 = vcvt.s32.f32 %v957_v7  ;;  %v3252_v12 = vand.u32 3, %v975_v50 }
 0x1d2   : > { %v3249_v0 = vshrl.u32 %v1775_v48, 30  ;;  %2036 = vst [vmem:[%s2745_s20 + $0x50] sm:$0xff] %v1505_v25  ;;  %v962_v45 = vand.u32 2147483647, %v961_v37  ;;  %v786_v10 = vor.u32 8388608, %v785_v22  ;;  %v795_v44 = vshll.u32 %v2385_v53, %v792_v1 }
 0x1d3   : > { %v796_v32 = vshrl.u32 %v2386_v57, %v793_v15  ;;  %v1613_v42 = vand.u32 2139095040, %v2847_v56  ;;  %v799_v5 = vshrl.u32 %v2387_v59, %v793_v15  ;;  %v802_v58 = vshrl.u32 %v2388_v61, %v793_v15 }
 0x1d4   : > { %v1777_v52 = vshll.u32 %v3249_v0, 30  ;;  %v965_v51 = vmul.f32 %v964_v2, %v962_v45  ;;  %v805_v16 = vshrl.u32 %v2389_v63, %v793_v15  ;;  %v791_v29 = vshrl.u32 %v790_v14, 5 }
 0x1d5   : > { %v798_v11 = vshll.u32 %v2386_v57, %v792_v1  ;;  %v801_v49 = vshll.u32 %v2387_v59, %v792_v1  ;;  %v797_v34 = vor.u32 %v796_v32, %v795_v44  ;;  %v804_v46 = vshll.u32 %v2388_v61, %v792_v1 }
 0x1d6   : > { %v3261_v9 = vsub.s32 %v1774_v33, %v1777_v52  ;;  %v966_v13 = vxor.u32 2147483648, %v965_v51  ;;  %v807_v23 = vshll.u32 %v2389_v63, %v792_v1  ;;  %v808_v47 = vshrl.u32 %v2390_v6, %v793_v15 }
 0x1d7   : > { %v800_v21 = vor.u32 %v799_v5, %v798_v11  ;;  %v803_v54 = vor.u32 %v802_v58, %v801_v49  ;;  %v1770_v62 = vadd.s32 %v3219_v3, %v3226_v26  ;;  %v806_v43 = vor.u32 %v805_v16, %v804_v46 }
 0x1d8   : > { %v1780_v19 = vsub.s32 0, %v3261_v9  ;;  %v967_v60 = vsel %vm884_vm12, %v966_v13, %v965_v51  ;;  %v826_v31 = vshll.u32 %v786_v10, 8  ;;  %v809_v50 = vor.u32 %v808_v47, %v807_v23 }
 0x1d9   : > { %v970_v40 = vsel %vm3209_vm15, %v2545_v38, %v967_v60  ;;  %v1614_v33 = vshrl.u32 %v1613_v42, 23  ;;  %v794_v14 = vshrl.u32 %v2385_v53, %v793_v15  ;;  %vm810_vm10 = vcmp.lt.s32.totalorder %v791_v29, 1 }
 0x1da   : > { %v2177_v20 = vmin.u32 %v1780_v19, %v3261_v9  ;;  %2345 = vcosq.f32 %v970_v40  ;;  %vm813_vm11 = vcmp.lt.s32.totalorder %v791_v29, 4  ;;  %vm1716_vm13 = vcmp.lt.s32.totalorder %v2641_v28, 0 }
 0x1db   : > { %2347 = vsinq.f32 %v970_v40  ;;  %v815_v3 = vsel %vm813_vm11, %v803_v54, 2102212464  ;;  %v818_v26 = vsel %vm810_vm10, %v797_v34, %v800_v21  ;;  %vm811_vm12 = vcmp.lt.s32.totalorder %v791_v29, 2 }
 0x1dc   : > { %v1782_v8 = vclz %v2177_v20  ;;  %vm812_vm14 = vcmp.lt.s32.totalorder %v791_v29, 3  ;;  %v819_v7 = vsel %vm813_vm11, %v806_v43, 920167782  ;;  %v822_v4 = vsel %vm810_vm10, %v800_v21, %v803_v54 }
 0x1dd   : > { %v814_v22 = vsel %vm810_vm10, %v794_v14, %v797_v34  ;;  %v820_v30 = vsel %vm812_vm14, %v803_v54, %v819_v7  ;;  %v823_v48 = vsel %vm813_vm11, %v809_v50, 1326507024  ;;  %v816_v1 = vsel %vm812_vm14, %v800_v21, %v815_v3 }
 0x1de   : > { %v2178_v41 = vadd.s32 4294967294, %v1782_v8  ;;  %v821_v36 = vsel %vm811_vm12, %v818_v26, %v820_v30  ;;  %v824_v37 = vsel %vm812_vm14, %v806_v43, %v823_v48  ;;  %v2172_v25 = vadd.s32 4294967169, %v1614_v33 }
 0x1df   : > { %v825_v15 = vsel %vm811_vm12, %v822_v4, %v824_v37  ;;  %v3281_v45 = vmul.u32.u64.low %v826_v31, %v821_v36  ;;  %v3282_v2 = vmul.u32.u64.high %v826_v31, %v821_v36, %v3281_v45  ;;  %v1800_v52 = vsub.s32 4, %v3249_v0 }
 0x1e0   : > { %vm2179_vm15 = vcmp.lt.s32.totalorder %v2178_v41, 0  ;;  %v3286_v44 = vmul.u32.u64.low %v826_v31, %v825_v15  ;;  %v3287_v32 = vmul.u32.u64.high %v826_v31, %v825_v15, %v3286_v44  ;;  %v817_v5 = vsel %vm811_vm12, %v814_v22, %v816_v1 }
 0x1e1   : > { %v1785_v10 = vsel %vm2179_vm15, 0, %v2178_v41  ;;  %v1620_v58 = vadd.s32 1, %v2172_v25  ;;  %vm978_vm0 = vcmp.eq.s32.totalorder %v3252_v12, 0  ;;  %vm3293_vm1 = vcmp.le.f32.partialorder %v1714_v27, 0.7853982 }
 0x1e2   : > { %v1786_v42 = vsub.s32 32, %v1785_v10  ;;  %v1790_v51 = vsub.s32 4294967266, %v1785_v10  ;;  %v1787_v11 = vshll.u32 %v3261_v9, %v1785_v10  ;;  %v1610_v49 = vand.u32 2147483647, %v2847_v56 }
 0x1e3   : > { %v836_v46 = vadd.s32 1, %v3282_v2  ;;  %vm1621_vm2 = vcmp.gt.s32.totalorder %v1620_v58, 0  ;;  %v1801_v23 = vsel %vm1716_vm13, %v1800_v52, %v3249_v0  ;;  %v833_v19 = vmul.u32 %v826_v31, %v817_v5 }
 0x1e4   : > { %v1788_v13 = vshrl.u32 %v1770_v62, %v1786_v42  ;;  %v1791_v34 = vadd.s32 127, %v1790_v51  ;;  %v2346_v29 = vpop.eup %2345  ;;  %vm835_vm3 = vc.u32 %v3287_v32, %v3281_v45  ;;  %v1622_v27 = vsel %vm1621_vm2, %v1620_v58, 0 }
 0x1e5   : > { %v2348_v21 = vpop.eup %2347  ;;  %v982_v54 = vxor.u32 2147483648, %v2346_v29  ;;  %v837_v60 = vsel %vm835_vm3, %v836_v46, %v3282_v2  ;;  %vm981_vm4 = vcmp.eq.s32.totalorder %v3252_v12, 2  ;;  %v1624_v40 = vand.u32 31, %v1622_v27 }
 0x1e6   : > { %v1789_v9 = vor.u32 %v1788_v13, %v1787_v11  ;;  %v1792_v47 = vshll.u32 %v1791_v34, 23  ;;  %v979_v62 = vxor.u32 2147483648, %v2348_v21  ;;  %v838_v43 = vadd.s32 %v837_v60, %v833_v19 }
 0x1e7   : > { %v983_v20 = vsel %vm981_vm4, %v982_v54, %v2348_v21  ;;  %v1803_v0 = vsel %vm3293_vm1, 0, %v1801_v23  ;;  %v1617_v31 = vand.u32 8388607, %v1610_v49  ;;  %vm977_vm5 = vcmp.lt.s32.totalorder %v3252_v12, 2 }
 0x1e8   : > { %v1793_v50 = vor.u32 4788187, %v1792_v47  ;;  %v980_v33 = vsel %vm978_vm0, %v2346_v29, %v979_v62  ;;  %v839_v14 = vadd.s32 536870912, %v838_v43  ;;  %v1625_v8 = vsub.s32 32, %v1624_v40 }
 0x1e9   : > { %vm974_vm6 = vweird.f32 %v2545_v38  ;;  %v984_v3 = vsel %vm977_vm5, %v980_v33, %v983_v20  ;;  %v1796_v7 = vcvt.s32.f32 %v1789_v9  ;;  %v1807_v41 = vadd.s32 3, %v1803_v0 }
 0x1ea   : > { %v1794_v26 = vand.u32 2147483647, %v1793_v50  ;;  %v985_v4 = vsel %vm974_vm6, nan, %v984_v3  ;;  %v840_v22 = vshrl.u32 %v839_v14, 30  ;;  %v1628_v30 = vshrl.u32 %v2386_v57, %v1625_v8 }
 0x1eb   : > { %2031 = vst [vmem:[%s2745_s20 + $0x28] sm:$0xff] %v985_v4  ;;  %v1618_v1 = vor.u32 8388608, %v1617_v31  ;;  %v1631_v36 = vshrl.u32 %v2387_v59, %v1625_v8  ;;  %v1634_v12 = vshrl.u32 %v2388_v61, %v1625_v8  ;;  %v1627_v25 = vshll.u32 %v2385_v53, %v1624_v40 }
 0x1ec   : > { %v1797_v48 = vmul.f32 %v1796_v7, %v1794_v26  ;;  %v841_v37 = vshll.u32 %v840_v22, 30  ;;  %v1630_v38 = vshll.u32 %v2386_v57, %v1624_v40  ;;  %v1637_v15 = vshrl.u32 %v2389_v63, %v1625_v8 }
 0x1ed   : > { %v1623_v10 = vshrl.u32 %v1622_v27, 5  ;;  %v1633_v52 = vshll.u32 %v2387_v59, %v1624_v40  ;;  %v1636_v44 = vshll.u32 %v2388_v61, %v1624_v40  ;;  %v1629_v51 = vor.u32 %v1628_v30, %v1627_v25 }
 0x1ee   : > { %v1798_v2 = vxor.u32 2147483648, %v1797_v48  ;;  %v3324_v42 = vsub.s32 %v838_v43, %v841_v37  ;;  %v1632_v5 = vor.u32 %v1631_v36, %v1630_v38  ;;  %v1640_v58 = vshrl.u32 %v2390_v6, %v1625_v8 }
 0x1ef   : > { %vm780_vm7 = vcmp.lt.s32.totalorder %v2752_v24, 0  ;;  %v1635_v13 = vor.u32 %v1634_v12, %v1633_v52  ;;  %v1638_v34 = vor.u32 %v1637_v15, %v1636_v44  ;;  %v1639_v46 = vshll.u32 %v2389_v63, %v1624_v40 }
 0x1f0   : > { %v1799_v11 = vsel %vm1716_vm13, %v1798_v2, %v1797_v48  ;;  %v3334_v23 = vand.u32 3, %v1807_v41  ;;  %v844_v19 = vsub.s32 0, %v3324_v42  ;;  %v1090_v27 = vand.u32 2147483647, %v2944_v39 }
 0x1f1   : > { %v1802_v29 = vsel %vm3293_vm1, %v2641_v28, %v1799_v11  ;;  %v1626_v21 = vshrl.u32 %v2385_v53, %v1625_v8  ;;  %v1641_v54 = vor.u32 %v1640_v58, %v1639_v46  ;;  %v1658_v9 = vshll.u32 %v1618_v1, 8 }
 0x1f2   : > { %2349 = vcosq.f32 %v1802_v29  ;;  %vm3341_vm8 = vcmp.le.f32.partialorder %v778_v35, 0.7853982  ;;  %v2141_v16 = vmin.u32 %v844_v19, %v3324_v42  ;;  %vm1642_vm9 = vcmp.lt.s32.totalorder %v1623_v10, 1 }
 0x1f3   : > { %2351 = vsinq.f32 %v1802_v29  ;;  %vm1645_vm10 = vcmp.lt.s32.totalorder %v1623_v10, 4  ;;  %v864_v60 = vsub.s32 4, %v840_v22  ;;  %v1650_v43 = vsel %vm1642_vm9, %v1629_v51, %v1632_v5 }
 0x1f4   : > { %v1647_v62 = vsel %vm1645_vm10, %v1635_v13, 2102212464  ;;  %v1651_v40 = vsel %vm1645_vm10, %v1638_v34, 920167782  ;;  %v846_v20 = vclz %v2141_v16  ;;  %vm1643_vm11 = vcmp.lt.s32.totalorder %v1623_v10, 2 }
 0x1f5   : > { %vm1644_vm13 = vcmp.lt.s32.totalorder %v1623_v10, 3  ;;  %v1654_v50 = vsel %vm1642_vm9, %v1632_v5, %v1635_v13  ;;  %v1646_v0 = vsel %vm1642_vm9, %v1626_v21, %v1629_v51  ;;  %v1655_v33 = vsel %vm1645_vm10, %v1641_v54, 1326507024 }
 0x1f6   : > { %v1652_v31 = vsel %vm1644_vm13, %v1635_v13, %v1651_v40  ;;  %v1093_v35 = vand.u32 2139095040, %v2944_v39  ;;  %v2142_v14 = vadd.s32 4294967294, %v846_v20  ;;  %v1648_v8 = vsel %vm1644_vm13, %v1632_v5, %v1647_v62 }
 0x1f7   : > { %v1653_v3 = vsel %vm1643_vm11, %v1650_v43, %v1652_v31  ;;  %v1656_v26 = vsel %vm1644_vm13, %v1638_v34, %v1655_v33  ;;  %vm1809_vm12 = vcmp.lt.s32.totalorder %v3334_v23, 2  ;;  %v865_v48 = vsel %vm780_vm7, %v864_v60, %v840_v22 }
 0x1f8   : > { %v1657_v7 = vsel %vm1643_vm11, %v1654_v50, %v1656_v26  ;;  %v3350_v4 = vmul.u32.u64.low %v1658_v9, %v1653_v3  ;;  %v3351_v41 = vmul.u32.u64.high %v1658_v9, %v1653_v3, %v3350_v4  ;;  %v1094_v30 = vshrl.u32 %v1093_v35, 23 }
 0x1f9   : > { %vm2143_vm14 = vcmp.lt.s32.totalorder %v2142_v14, 0  ;;  %v3356_v1 = vmul.u32.u64.low %v1658_v9, %v1657_v7  ;;  %v3357_v36 = vmul.u32.u64.high %v1658_v9, %v1657_v7, %v3356_v1  ;;  %vm1810_vm15 = vcmp.eq.s32.totalorder %v3334_v23, 0 }
 0x1fa   : > { %vm1813_vm0 = vcmp.eq.s32.totalorder %v3334_v23, 2  ;;  %v849_v12 = vsel %vm2143_vm14, 0, %v2142_v14  ;;  %v2152_v37 = vadd.s32 4294967169, %v1094_v30  ;;  %v834_v25 = vadd.s32 %v3281_v45, %v3287_v32 }
 0x1fb   : > { %v850_v38 = vsub.s32 32, %v849_v12  ;;  %v854_v15 = vsub.s32 4294967266, %v849_v12  ;;  %v1649_v2 = vsel %vm1643_vm11, %v1646_v0, %v1648_v8  ;;  %v867_v22 = vsel %vm3341_vm8, 0, %v865_v48 }
 0x1fc   : > { %v2350_v52 = vpop.eup %2349  ;;  %v1668_v44 = vadd.s32 1, %v3351_v41  ;;  %v1097_v51 = vand.u32 8388607, %v1090_v27  ;;  %v1100_v5 = vadd.s32 1, %v2152_v37  ;;  %v851_v13 = vshll.u32 %v3324_v42, %v849_v12 }
 0x1fd   : > { %v2352_v58 = vpop.eup %2351  ;;  %v1814_v11 = vxor.u32 2147483648, %v2350_v52  ;;  %v852_v34 = vshrl.u32 %v834_v25, %v850_v38  ;;  %v855_v45 = vadd.s32 127, %v854_v15  ;;  %v1665_v46 = vmul.u32 %v1658_v9, %v1649_v2 }
 0x1fe   : > { %v1811_v32 = vxor.u32 2147483648, %v2352_v58  ;;  %vm1667_vm1 = vc.u32 %v3357_v36, %v3350_v4  ;;  %vm1101_vm2 = vcmp.gt.s32.totalorder %v1100_v5, 0  ;;  %v871_v42 = vadd.s32 3, %v867_v22 }
 0x1ff   : > { %v1815_v10 = vsel %vm1813_vm0, %v1814_v11, %v2352_v58  ;;  %v853_v29 = vor.u32 %v852_v34, %v851_v13  ;;  %v856_v19 = vshll.u32 %v855_v45, 23  ;;  %v1669_v21 = vsel %vm1667_vm1, %v1668_v44, %v3351_v41 }
 0x200   : > { %v1812_v54 = vsel %vm1810_vm15, %v2350_v52, %v1811_v32  ;;  %v1670_v16 = vadd.s32 %v1669_v21, %v1665_v46  ;;  %v1102_v60 = vsel %vm1101_vm2, %v1100_v5, 0  ;;  %vm1806_vm3 = vweird.f32 %v2641_v28 }
 0x201   : > { %v1816_v9 = vsel %vm1809_vm12, %v1812_v54, %v1815_v10  ;;  %v857_v62 = vor.u32 4788187, %v856_v19  ;;  %v1098_v43 = vor.u32 8388608, %v1097_v51  ;;  %v1104_v50 = vand.u32 31, %v1102_v60 }
 0x202   : > { %v1817_v40 = vsel %vm1806_vm3, nan, %v1816_v9  ;;  %v1671_v20 = vadd.s32 536870912, %v1670_v16  ;;  %v860_v31 = vcvt.s32.f32 %v853_v29  ;;  %v3381_v33 = vand.u32 3, %v871_v42 }
 0x203   : > { %2039 = vst [vmem:[%s2745_s20 + $0x68] sm:$0xff] %v1817_v40  ;;  %v858_v0 = vand.u32 2147483647, %v857_v62  ;;  %v1105_v14 = vsub.s32 32, %v1104_v50  ;;  %v3383_v3 = vshrl.u32 %v1102_v60, 5  ;;  %v3385_v26 = vshll.u32 %v1098_v43, 8 }
 0x204   : > { %v1672_v35 = vshrl.u32 %v1671_v20, 30  ;;  %v1925_v28 = vand.u32 2139095040, %v2997_v17  ;;  %vm1612_vm4 = vcmp.lt.s32.totalorder %v2847_v56, 0  ;;  %v1107_v7 = vshll.u32 %v2385_v53, %v1104_v50 }
 0x205   : > { %v861_v8 = vmul.f32 %v860_v31, %v858_v0  ;;  %v1108_v41 = vshrl.u32 %v2386_v57, %v1105_v14  ;;  %v1110_v30 = vshll.u32 %v2386_v57, %v1104_v50  ;;  %v1111_v1 = vshrl.u32 %v2387_v59, %v1105_v14 }
 0x206   : > { %v1673_v23 = vshll.u32 %v1672_v35, 30  ;;  %v1114_v12 = vshrl.u32 %v2388_v61, %v1105_v14  ;;  %v1117_v37 = vshrl.u32 %v2389_v63, %v1105_v14  ;;  %v1113_v38 = vshll.u32 %v2387_v59, %v1104_v50 }
 0x207   : > { %v862_v48 = vxor.u32 2147483648, %v861_v8  ;;  %v1116_v15 = vshll.u32 %v2388_v61, %v1104_v50  ;;  %v1120_v2 = vshrl.u32 %v2390_v6, %v1105_v14  ;;  %v1109_v22 = vor.u32 %v1108_v41, %v1107_v7 }
 0x208   : > { %v3395_v25 = vsub.s32 %v1670_v16, %v1673_v23  ;;  %v1112_v44 = vor.u32 %v1111_v1, %v1110_v30  ;;  %v1119_v51 = vshll.u32 %v2389_v63, %v1104_v50  ;;  %v1115_v11 = vor.u32 %v1114_v12, %v1113_v38 }
 0x209   : > { %v863_v52 = vsel %vm780_vm7, %v862_v48, %v861_v8  ;;  %v1118_v13 = vor.u32 %v1117_v37, %v1116_v15  ;;  %v1696_v34 = vsub.s32 4, %v1672_v35  ;;  %v1926_v32 = vshrl.u32 %v1925_v28, 23 }
 0x20a   : > { %v866_v5 = vsel %vm3341_vm8, %v2752_v24, %v863_v52  ;;  %v1676_v58 = vsub.s32 0, %v3395_v25  ;;  %v1121_v45 = vor.u32 %v1120_v2, %v1119_v51  ;;  %vm3409_vm5 = vcmp.le.f32.partialorder %v1610_v49, 0.7853982 }
 0x20b   : > { %2353 = vcosq.f32 %v866_v5  ;;  %vm1122_vm6 = vcmp.lt.s32.totalorder %v3383_v3, 1  ;;  %vm1125_vm7 = vcmp.lt.s32.totalorder %v3383_v3, 4  ;;  %vm1123_vm8 = vcmp.lt.s32.totalorder %v3383_v3, 2 }
 0x20c   : > { %2355 = vsinq.f32 %v866_v5  ;;  %v2173_v10 = vmin.u32 %v1676_v58, %v3395_v25  ;;  %vm1124_vm9 = vcmp.lt.s32.totalorder %v3383_v3, 3  ;;  %v1130_v47 = vsel %vm1122_vm6, %v1109_v22, %v1112_v44 }
 0x20d   : > { %v1131_v29 = vsel %vm1125_vm7, %v1118_v13, 920167782  ;;  %v1106_v21 = vshrl.u32 %v2385_v53, %v1105_v14  ;;  %v1127_v54 = vsel %vm1125_vm7, %v1115_v11, 2102212464  ;;  %v1134_v49 = vsel %vm1122_vm6, %v1112_v44, %v1115_v11 }
 0x20e   : > { %v1678_v19 = vclz %v2173_v10  ;;  %v1697_v42 = vsel %vm1612_vm4, %v1696_v34, %v1672_v35  ;;  %v1132_v16 = vsel %vm1124_vm9, %v1115_v11, %v1131_v29  ;;  %v1135_v60 = vsel %vm1125_vm7, %v1121_v45, 1326507024 }
 0x20f   : > { %v2184_v9 = vadd.s32 4294967169, %v1926_v32  ;;  %v1126_v43 = vsel %vm1122_vm6, %v1106_v21, %v1109_v22  ;;  %v1133_v40 = vsel %vm1123_vm8, %v1130_v47, %v1132_v16  ;;  %v1136_v20 = vsel %vm1124_vm9, %v1118_v13, %v1135_v60 }
 0x210   : > { %v2174_v62 = vadd.s32 4294967294, %v1678_v19  ;;  %v1128_v50 = vsel %vm1124_vm9, %v1112_v44, %v1127_v54  ;;  %v1137_v0 = vsel %vm1123_vm8, %v1134_v49, %v1136_v20  ;;  %vm874_vm11 = vcmp.eq.s32.totalorder %v3381_v33, 0 }
 0x211   : > { %v3426_v31 = vmul.u32.u64.low %v3385_v26, %v1133_v40  ;;  %v3427_v14 = vmul.u32.u64.high %v3385_v26, %v1133_v40, %v3426_v31  ;;  %v3431_v35 = vmul.u32.u64.low %v3385_v26, %v1137_v0  ;;  %v3432_v8 = vmul.u32.u64.high %v3385_v26, %v1137_v0, %v3431_v35 }
 0x212   : > { %vm2175_vm10 = vcmp.lt.s32.totalorder %v2174_v62, 0  ;;  %v1932_v28 = vadd.s32 1, %v2184_v9  ;;  %vm877_vm13 = vcmp.eq.s32.totalorder %v3381_v33, 2  ;;  %v1666_v23 = vadd.s32 %v3350_v4, %v3357_v36 }
 0x213   : > { %v1681_v7 = vsel %vm2175_vm10, 0, %v2174_v62  ;;  %v1129_v48 = vsel %vm1123_vm8, %v1126_v43, %v1128_v50  ;;  %v1699_v12 = vsel %vm3409_vm5, 0, %v1697_v42  ;;  %v1148_v37 = vadd.s32 1, %v3427_v14 }
 0x214   : > { %v1682_v41 = vsub.s32 32, %v1681_v7  ;;  %v1686_v30 = vsub.s32 4294967266, %v1681_v7  ;;  %vm1933_vm12 = vcmp.gt.s32.totalorder %v1932_v28, 0  ;;  %v1922_v38 = vand.u32 2147483647, %v2997_v17 }
 0x215   : > { %v2354_v1 = vpop.eup %2353  ;;  %v1934_v15 = vsel %vm1933_vm12, %v1932_v28, 0  ;;  %v1683_v4 = vshll.u32 %v3395_v25, %v1681_v7  ;;  %v1145_v3 = vmul.u32 %v3385_v26, %v1129_v48  ;;  %vm1147_vm14 = vc.u32 %v3432_v8, %v3426_v31 }
 0x216   : > { %v2356_v2 = vpop.eup %2355  ;;  %v878_v52 = vxor.u32 2147483648, %v2354_v1  ;;  %v1684_v36 = vshrl.u32 %v1666_v23, %v1682_v41  ;;  %v1687_v22 = vadd.s32 127, %v1686_v30  ;;  %v1936_v51 = vand.u32 31, %v1934_v15 }
 0x217   : > { %v875_v44 = vxor.u32 2147483648, %v2356_v2  ;;  %v1149_v13 = vsel %vm1147_vm14, %v1148_v37, %v3427_v14  ;;  %vm873_vm15 = vcmp.lt.s32.totalorder %v3381_v33, 2  ;;  %vm870_vm0 = vweird.f32 %v2752_v24 }
 0x218   : > { %v879_v5 = vsel %vm877_vm13, %v878_v52, %v2356_v2  ;;  %v1685_v58 = vor.u32 %v1684_v36, %v1683_v4  ;;  %v1688_v11 = vshll.u32 %v1687_v22, 23  ;;  %v1150_v34 = vadd.s32 %v1149_v13, %v1145_v3 }
 0x219   : > { %v876_v25 = vsel %vm874_vm11, %v2354_v1, %v875_v44  ;;  %v1937_v45 = vsub.s32 32, %v1936_v51  ;;  %v1703_v47 = vadd.s32 3, %v1699_v12  ;;  %v1929_v49 = vand.u32 8388607, %v1922_v38 }
 0x21a   : > { %v880_v26 = vsel %vm873_vm15, %v876_v25, %v879_v5  ;;  %v1689_v32 = vor.u32 4788187, %v1688_v11  ;;  %v1151_v29 = vadd.s32 536870912, %v1150_v34  ;;  %v1692_v54 = vcvt.s32.f32 %v1685_v58 }
 0x21b   : > { %v881_v10 = vsel %vm870_vm0, nan, %v880_v26  ;;  %v1940_v19 = vshrl.u32 %v2386_v57, %v1937_v45  ;;  %v1943_v33 = vshrl.u32 %v2387_v59, %v1937_v45  ;;  %v1939_v16 = vshll.u32 %v2385_v53, %v1936_v51 }
 0x21c   : > { %2030 = vst [vmem:[%s2745_s20 + $0x20] sm:$0xff] %v881_v10  ;;  %v1690_v21 = vand.u32 2147483647, %v1689_v32  ;;  %v1152_v42 = vshrl.u32 %v1151_v29, 30  ;;  %v1946_v24 = vshrl.u32 %v2388_v61, %v1937_v45  ;;  %v1949_v60 = vshrl.u32 %v2389_v63, %v1937_v45 }
 0x21d   : > { %v1935_v62 = vshrl.u32 %v1934_v15, 5  ;;  %v1942_v43 = vshll.u32 %v2386_v57, %v1936_v51  ;;  %v1948_v40 = vshll.u32 %v2388_v61, %v1936_v51  ;;  %v1941_v50 = vor.u32 %v1940_v19, %v1939_v16 }
 0x21e   : > { %v1693_v9 = vmul.f32 %v1692_v54, %v1690_v21  ;;  %v1153_v20 = vshll.u32 %v1152_v42, 30  ;;  %v1945_v0 = vshll.u32 %v2387_v59, %v1936_v51  ;;  %v1952_v14 = vshrl.u32 %v2390_v6, %v1937_v45 }
 0x21f   : > { %v1944_v28 = vor.u32 %v1943_v33, %v1942_v43  ;;  %v1950_v23 = vor.u32 %v1949_v60, %v1948_v40  ;;  %v1951_v7 = vshll.u32 %v2389_v63, %v1936_v51  ;;  %v3468_v41 = vand.u32 3, %v1703_v47 }
 0x220   : > { %v1694_v35 = vxor.u32 2147483648, %v1693_v9  ;;  %v3470_v30 = vsub.s32 %v1150_v34, %v1153_v20  ;;  %v1930_v48 = vor.u32 8388608, %v1929_v49  ;;  %v1947_v1 = vor.u32 %v1946_v24, %v1945_v0 }
 0x221   : > { %v1938_v37 = vshrl.u32 %v2385_v53, %v1937_v45  ;;  %v1953_v15 = vor.u32 %v1952_v14, %v1951_v7  ;;  %vm1954_vm1 = vcmp.lt.s32.totalorder %v1935_v62, 1  ;;  %vm1955_vm2 = vcmp.lt.s32.totalorder %v1935_v62, 2 }
 0x222   : > { %v1695_v12 = vsel %vm1612_vm4, %v1694_v35, %v1693_v9  ;;  %v1156_v52 = vsub.s32 0, %v3470_v30  ;;  %vm1957_vm3 = vcmp.lt.s32.totalorder %v1935_v62, 4  ;;  %vm1956_vm6 = vcmp.lt.s32.totalorder %v1935_v62, 3 }
 0x223   : > { %v1698_v2 = vsel %vm3409_vm5, %v2847_v56, %v1695_v12  ;;  %v1962_v4 = vsel %vm1954_vm1, %v1941_v50, %v1944_v28  ;;  %v1963_v36 = vsel %vm1957_vm3, %v1950_v23, 920167782  ;;  %v1959_v44 = vsel %vm1957_vm3, %v1947_v1, 2102212464 }
 0x224   : > { %2357 = vcosq.f32 %v1698_v2  ;;  %v2153_v22 = vmin.u32 %v1156_v52, %v3470_v30  ;;  %v1964_v3 = vsel %vm1956_vm6, %v1947_v1, %v1963_v36  ;;  %v1966_v46 = vsel %vm1954_vm1, %v1944_v28, %v1947_v1 }
 0x225   : > { %2359 = vsinq.f32 %v1698_v2  ;;  %v1965_v51 = vsel %vm1955_vm2, %v1962_v4, %v1964_v3  ;;  %v1967_v5 = vsel %vm1957_vm3, %v1953_v15, 1326507024  ;;  %v1970_v58 = vshll.u32 %v1930_v48, 8 }
 0x226   : > { %vm1092_vm4 = vcmp.lt.s32.totalorder %v2944_v39, 0  ;;  %v1158_v11 = vclz %v2153_v22  ;;  %v1176_v13 = vsub.s32 4, %v1152_v42  ;;  %v1958_v25 = vsel %vm1954_vm1, %v1938_v37, %v1941_v50 }
 0x227   : > { %v1960_v34 = vsel %vm1956_vm6, %v1944_v28, %v1959_v44  ;;  %v1968_v45 = vsel %vm1956_vm6, %v1950_v23, %v1967_v5  ;;  %v3488_v26 = vmul.u32.u64.low %v1970_v58, %v1965_v51  ;;  %v3489_v32 = vmul.u32.u64.high %v1970_v58, %v1965_v51, %v3488_v26 }
 0x228   : > { %vm3494_vm5 = vcmp.le.f32.partialorder %v1090_v27, 0.7853982  ;;  %v2154_v47 = vadd.s32 4294967294, %v1158_v11  ;;  %v1969_v29 = vsel %vm1955_vm2, %v1966_v46, %v1968_v45  ;;  %v989_v19 = vand.u32 2139095040, %v3072_v55 }
 0x229   : > { %vm1705_vm7 = vcmp.lt.s32.totalorder %v3468_v41, 2  ;;  %vm1709_vm8 = vcmp.eq.s32.totalorder %v3468_v41, 2  ;;  %v3502_v21 = vmul.u32.u64.low %v1970_v58, %v1969_v29  ;;  %v3503_v54 = vmul.u32.u64.high %v1970_v58, %v1969_v29, %v3502_v21 }
 0x22a   : > { %vm1702_vm9 = vweird.f32 %v2847_v56  ;;  %vm2155_vm10 = vcmp.lt.s32.totalorder %v2154_v47, 0  ;;  %v1177_v27 = vsel %vm1092_vm4, %v1176_v13, %v1152_v42  ;;  %v1961_v49 = vsel %vm1955_vm2, %v1958_v25, %v1960_v34 }
 0x22b   : > { %v990_v33 = vshrl.u32 %v989_v19, 23  ;;  %v1161_v16 = vsel %vm2155_vm10, 0, %v2154_v47  ;;  %v1980_v24 = vadd.s32 1, %v3489_v32  ;;  %v986_v60 = vand.u32 2147483647, %v3072_v55 }
 0x22c   : > { %v1821_v9 = vand.u32 2139095040, %v3170_v18  ;;  %v1146_v43 = vadd.s32 %v3426_v31, %v3432_v8  ;;  %v1162_v40 = vsub.s32 32, %v1161_v16  ;;  %v1166_v20 = vsub.s32 4294967266, %v1161_v16 }
 0x22d   : > { %v2148_v50 = vadd.s32 4294967169, %v990_v33  ;;  %v1163_v14 = vshll.u32 %v3470_v30, %v1161_v16  ;;  %v1179_v42 = vsel %vm3494_vm5, 0, %v1177_v27  ;;  %v1977_v62 = vmul.u32 %v1970_v58, %v1961_v49 }
 0x22e   : > { %v2358_v0 = vpop.eup %2357  ;;  %vm1979_vm11 = vc.u32 %v3503_v54, %v3488_v26  ;;  %v1164_v23 = vshrl.u32 %v1146_v43, %v1162_v40  ;;  %v1167_v7 = vadd.s32 127, %v1166_v20  ;;  %v1822_v12 = vshrl.u32 %v1821_v9, 23 }
 0x22f   : > { %v2360_v35 = vpop.eup %2359  ;;  %v1710_v28 = vxor.u32 2147483648, %v2358_v0  ;;  %v1981_v48 = vsel %vm1979_vm11, %v1980_v24, %v3489_v32  ;;  %v996_v1 = vadd.s32 1, %v2148_v50  ;;  %vm1706_vm13 = vcmp.eq.s32.totalorder %v3468_v41, 0 }
 0x230   : > { %v1707_v31 = vxor.u32 2147483648, %v2360_v35  ;;  %v1982_v8 = vadd.s32 %v1981_v48, %v1977_v62  ;;  %v1165_v37 = vor.u32 %v1164_v23, %v1163_v14  ;;  %v1168_v15 = vshll.u32 %v1167_v7, 23 }
 0x231   : > { %v1711_v30 = vsel %vm1709_vm8, %v1710_v28, %v2360_v35  ;;  %v1183_v52 = vadd.s32 3, %v1179_v42  ;;  %vm997_vm12 = vcmp.gt.s32.totalorder %v996_v1, 0  ;;  %v993_v44 = vand.u32 8388607, %v986_v60 }
 0x232   : > { %v1708_v2 = vsel %vm1706_vm13, %v2358_v0, %v1707_v31  ;;  %v1983_v4 = vadd.s32 536870912, %v1982_v8  ;;  %v1169_v22 = vor.u32 4788187, %v1168_v15  ;;  %v998_v3 = vsel %vm997_vm12, %v996_v1, 0 }
 0x233   : > { %v1712_v36 = vsel %vm1705_vm7, %v1708_v2, %v1711_v30  ;;  %v1000_v5 = vand.u32 31, %v998_v3  ;;  %v2180_v58 = vadd.s32 4294967169, %v1822_v12  ;;  %v1172_v13 = vcvt.s32.f32 %v1165_v37 }
 0x234   : > { %v1713_v51 = vsel %vm1702_vm9, nan, %v1712_v36  ;;  %v3529_v46 = vshrl.u32 %v1983_v4, 30  ;;  %v1170_v11 = vand.u32 2147483647, %v1169_v22  ;;  %v3533_v45 = vand.u32 3, %v1183_v52 }
 0x235   : > { %2038 = vst [vmem:[%s2745_s20 + $0x60] sm:$0xff] %v1713_v51  ;;  %v1001_v34 = vsub.s32 32, %v1000_v5  ;;  %v1818_v32 = vand.u32 2147483647, %v3170_v18  ;;  %v994_v29 = vor.u32 8388608, %v993_v44  ;;  %v1828_v19 = vadd.s32 1, %v2180_v58 }
 0x236   : > { %v1985_v25 = vshll.u32 %v3529_v46, 30  ;;  %v1173_v41 = vmul.f32 %v1172_v13, %v1170_v11  ;;  %v1003_v27 = vshll.u32 %v2385_v53, %v1000_v5  ;;  %v1006_v24 = vshll.u32 %v2386_v57, %v1000_v5 }
 0x237   : > { %v1004_v56 = vshrl.u32 %v2386_v57, %v1001_v34  ;;  %v1007_v49 = vshrl.u32 %v2387_v59, %v1001_v34  ;;  %v1010_v33 = vshrl.u32 %v2388_v61, %v1001_v34  ;;  %v1009_v9 = vshll.u32 %v2387_v59, %v1000_v5 }
 0x238   : > { %v3536_v47 = vsub.s32 %v1982_v8, %v1985_v25  ;;  %v1174_v21 = vxor.u32 2147483648, %v1173_v41  ;;  %v1013_v43 = vshrl.u32 %v2389_v63, %v1001_v34  ;;  %v999_v20 = vshrl.u32 %v998_v3, 5 }
 0x239   : > { %v1005_v50 = vor.u32 %v1004_v56, %v1003_v27  ;;  %v1012_v0 = vshll.u32 %v2388_v61, %v1000_v5  ;;  %v1008_v62 = vor.u32 %v1007_v49, %v1006_v24  ;;  %v1011_v35 = vor.u32 %v1010_v33, %v1009_v9 }
 0x23a   : > { %v1988_v16 = vsub.s32 0, %v3536_v47  ;;  %v1175_v40 = vsel %vm1092_vm4, %v1174_v21, %v1173_v41  ;;  %v1015_v23 = vshll.u32 %v2389_v63, %v1000_v5  ;;  %v1016_v7 = vshrl.u32 %v2390_v6, %v1001_v34 }
 0x23b   : > { %v1178_v14 = vsel %vm3494_vm5, %v2944_v39, %v1175_v40  ;;  %v1014_v28 = vor.u32 %v1013_v43, %v1012_v0  ;;  %v1978_v48 = vadd.s32 %v3488_v26, %v3503_v54  ;;  %v1034_v8 = vshll.u32 %v994_v29, 8 }
 0x23c   : > { %v2185_v42 = vmin.u32 %v1988_v16, %v3536_v47  ;;  %2361 = vcosq.f32 %v1178_v14  ;;  %v1002_v1 = vshrl.u32 %v2385_v53, %v1001_v34  ;;  %v1017_v10 = vor.u32 %v1016_v7, %v1015_v23 }
 0x23d   : > { %2363 = vsinq.f32 %v1178_v14  ;;  %vm1018_vm14 = vcmp.lt.s32.totalorder %v999_v20, 1  ;;  %vm1829_vm15 = vcmp.gt.s32.totalorder %v1828_v19, 0  ;;  %vm1020_vm0 = vcmp.lt.s32.totalorder %v999_v20, 3 }
 0x23e   : > { %v1990_v31 = vclz %v2185_v42  ;;  %vm1021_vm1 = vcmp.lt.s32.totalorder %v999_v20, 4  ;;  %v1026_v30 = vsel %vm1018_vm14, %v1005_v50, %v1008_v62  ;;  %v1030_v2 = vsel %vm1018_vm14, %v1008_v62, %v1011_v35 }
 0x23f   : > { %v1023_v37 = vsel %vm1021_vm1, %v1011_v35, 2102212464  ;;  %v1027_v15 = vsel %vm1021_vm1, %v1014_v28, 920167782  ;;  %v1031_v52 = vsel %vm1021_vm1, %v1017_v10, 1326507024  ;;  %v1022_v36 = vsel %vm1018_vm14, %v1002_v1, %v1005_v50 }
 0x240   : > { %v2186_v12 = vadd.s32 4294967294, %v1990_v31  ;;  %vm1924_vm2 = vcmp.lt.s32.totalorder %v2997_v17, 0  ;;  %vm1019_vm6 = vcmp.lt.s32.totalorder %v999_v20, 2  ;;  %v1028_v26 = vsel %vm1020_vm0, %v1011_v35, %v1027_v15 }
 0x241   : > { %v1032_v54 = vsel %vm1020_vm0, %v1014_v28, %v1031_v52  ;;  %v1029_v22 = vsel %vm1019_vm6, %v1026_v30, %v1028_v26  ;;  %vm1182_vm4 = vweird.f32 %v2944_v39  ;;  %v1024_v5 = vsel %vm1020_vm0, %v1008_v62, %v1023_v37 }
 0x242   : > { %vm2187_vm3 = vcmp.lt.s32.totalorder %v2186_v12, 0  ;;  %v1033_v44 = vsel %vm1019_vm6, %v1030_v2, %v1032_v54  ;;  %v1830_v58 = vsel %vm1829_vm15, %v1828_v19, 0  ;;  %vm1185_vm5 = vcmp.lt.s32.totalorder %v3533_v45, 2 }
 0x243   : > { %v1993_v4 = vsel %vm2187_vm3, 0, %v2186_v12  ;;  %v3569_v11 = vmul.u32.u64.low %v1034_v8, %v1033_v44  ;;  %v3570_v13 = vmul.u32.u64.high %v1034_v8, %v1033_v44, %v3569_v11  ;;  %v1832_v21 = vand.u32 31, %v1830_v58 }
 0x244   : > { %v1994_v3 = vsub.s32 32, %v1993_v4  ;;  %v1998_v51 = vsub.s32 4294967266, %v1993_v4  ;;  %v3572_v25 = vmul.u32.u64.low %v1034_v8, %v1029_v22  ;;  %v3573_v34 = vmul.u32.u64.high %v1034_v8, %v1029_v22, %v3572_v25 }
 0x245   : > { %v1995_v41 = vshll.u32 %v3536_v47, %v1993_v4  ;;  %vm1186_vm7 = vcmp.eq.s32.totalorder %v3533_v45, 0  ;;  %v2008_v49 = vsub.s32 4, %v3529_v46  ;;  %v1025_v19 = vsel %vm1019_vm6, %v1022_v36, %v1024_v5 }
 0x246   : > { %v1996_v29 = vshrl.u32 %v1978_v48, %v1994_v3  ;;  %v1999_v56 = vadd.s32 127, %v1998_v51  ;;  %v2362_v27 = vpop.eup %2361  ;;  %v1833_v43 = vsub.s32 32, %v1832_v21  ;;  %vm1189_vm8 = vcmp.eq.s32.totalorder %v3533_v45, 2 }
 0x247   : > { %v2364_v33 = vpop.eup %2363  ;;  %v1190_v16 = vxor.u32 2147483648, %v2362_v27  ;;  %vm1043_vm9 = vc.u32 %v3570_v13, %v3572_v25  ;;  %v1044_v47 = vadd.s32 1, %v3573_v34  ;;  %v1041_v14 = vmul.u32 %v1034_v8, %v1025_v19 }
 0x248   : > { %v1997_v24 = vor.u32 %v1996_v29, %v1995_v41  ;;  %v2000_v9 = vshll.u32 %v1999_v56, 23  ;;  %v1187_v40 = vxor.u32 2147483648, %v2364_v33  ;;  %v1825_v20 = vand.u32 8388607, %v1818_v32 }
 0x249   : > { %v1191_v50 = vsel %vm1189_vm8, %v1190_v16, %v2364_v33  ;;  %v2009_v62 = vsel %vm1924_vm2, %v2008_v49, %v3529_v46  ;;  %v1045_v35 = vsel %vm1043_vm9, %v1044_v47, %v3573_v34  ;;  %v1836_v28 = vshrl.u32 %v2386_v57, %v1833_v43 }
 0x24a   : > { %v2001_v0 = vor.u32 4788187, %v2000_v9  ;;  %v1188_v42 = vsel %vm1186_vm7, %v2362_v27, %v1187_v40  ;;  %v2004_v48 = vcvt.s32.f32 %v1997_v24  ;;  %v1046_v31 = vadd.s32 %v1045_v35, %v1041_v14 }
 0x24b   : > { %v1192_v23 = vsel %vm1185_vm5, %v1188_v42, %v1191_v50  ;;  %v1831_v1 = vshrl.u32 %v1830_v58, 5  ;;  %v1835_v10 = vshll.u32 %v2385_v53, %v1832_v21  ;;  %v1839_v12 = vshrl.u32 %v2387_v59, %v1833_v43 }
 0x24c   : > { %v2002_v7 = vand.u32 2147483647, %v2001_v0  ;;  %v1193_v8 = vsel %vm1182_vm4, nan, %v1192_v23  ;;  %v1047_v30 = vadd.s32 536870912, %v1046_v31  ;;  %v1838_v37 = vshll.u32 %v2386_v57, %v1832_v21 }
 0x24d   : > { %2033 = vst [vmem:[%s2745_s20 + $0x38] sm:$0xff] %v1193_v8  ;;  %v1842_v15 = vshrl.u32 %v2388_v61, %v1833_v43  ;;  %v1837_v45 = vor.u32 %v1836_v28, %v1835_v10  ;;  %v1844_v2 = vshll.u32 %v2388_v61, %v1832_v21  ;;  %v1845_v52 = vshrl.u32 %v2389_v63, %v1833_v43 }
 0x24e   : > { %v2005_v46 = vmul.f32 %v2004_v48, %v2002_v7  ;;  %v1848_v39 = vshrl.u32 %v2390_v6, %v1833_v43  ;;  %v3606_v54 = vshrl.u32 %v1047_v30, 30  ;;  %v1840_v4 = vor.u32 %v1839_v12, %v1838_v37 }
 0x24f   : > { %v1841_v36 = vshll.u32 %v2387_v59, %v1832_v21  ;;  %vm3611_vm10 = vcmp.le.f32.partialorder %v1922_v38, 0.7853982  ;;  %v1846_v57 = vor.u32 %v1845_v52, %v1844_v2  ;;  %v1847_v44 = vshll.u32 %v2389_v63, %v1832_v21 }
 0x250   : > { %v2006_v26 = vxor.u32 2147483648, %v2005_v46  ;;  %v2011_v6 = vsel %vm3611_vm10, 0, %v2009_v62  ;;  %v1049_v3 = vshll.u32 %v3606_v54, 30  ;;  %v1826_v38 = vor.u32 8388608, %v1825_v20 }
 0x251   : > { %v1843_v51 = vor.u32 %v1842_v15, %v1841_v36  ;;  %v1849_v5 = vor.u32 %v1848_v39, %v1847_v44  ;;  %vm1850_vm11 = vcmp.lt.s32.totalorder %v1831_v1, 1  ;;  %vm1853_vm13 = vcmp.lt.s32.totalorder %v1831_v1, 4 }
 0x252   : > { %v2007_v61 = vsel %vm1924_vm2, %v2006_v26, %v2005_v46  ;;  %v1050_v58 = vsub.s32 %v1046_v31, %v1049_v3  ;;  %v1858_v63 = vsel %vm1850_vm11, %v1837_v45, %v1840_v4  ;;  %v2015_v11 = vadd.s32 3, %v2011_v6 }
 0x253   : > { %v2010_v59 = vsel %vm3611_vm10, %v2997_v17, %v2007_v61  ;;  %vm1852_vm12 = vcmp.lt.s32.totalorder %v1831_v1, 3  ;;  %v1859_v34 = vsel %vm1853_vm13, %v1846_v57, 920167782  ;;  %vm1851_vm14 = vcmp.lt.s32.totalorder %v1831_v1, 2 }
 0x254   : > { %2365 = vcosq.f32 %v2010_v59  ;;  %v1052_v41 = vsub.s32 0, %v1050_v58  ;;  %v1860_v29 = vsel %vm1852_vm12, %v1843_v51, %v1859_v34  ;;  %v1862_v56 = vsel %vm1850_vm11, %v1840_v4, %v1843_v51 }
 0x255   : > { %2367 = vsinq.f32 %v2010_v59  ;;  %v1855_v21 = vsel %vm1853_vm13, %v1843_v51, 2102212464  ;;  %v1861_v27 = vsel %vm1851_vm14, %v1858_v63, %v1860_v29  ;;  %v1863_v49 = vsel %vm1853_vm13, %v1849_v5, 1326507024 }
 0x256   : > { %v1866_v19 = vshll.u32 %v1826_v38, 8  ;;  %v2149_v33 = vmin.u32 %v1052_v41, %v1050_v58  ;;  %v1834_v16 = vshrl.u32 %v2385_v53, %v1833_v43  ;;  %v1864_v24 = vsel %vm1852_vm12, %v1846_v57, %v1863_v49 }
 0x257   : > { %v1865_v9 = vsel %vm1851_vm14, %v1862_v56, %v1864_v24  ;;  %v2016_v50 = vand.u32 3, %v2015_v11  ;;  %v1856_v20 = vsel %vm1852_vm12, %v1840_v4, %v1855_v21  ;;  %v1042_v48 = vadd.s32 %v3572_v25, %v3570_v13 }
 0x258   : > { %v3631_v40 = vmul.u32.u64.low %v1866_v19, %v1861_v27  ;;  %v3632_v47 = vmul.u32.u64.high %v1866_v19, %v1861_v27, %v3631_v40  ;;  %v1054_v0 = vclz %v2149_v33  ;;  %v1854_v14 = vsel %vm1850_vm11, %v1834_v16, %v1837_v45 }
 0x259   : > { %v3637_v42 = vmul.u32.u64.low %v1866_v19, %v1865_v9  ;;  %v3638_v62 = vmul.u32.u64.high %v1866_v19, %v1865_v9, %v3637_v42  ;;  %v1857_v53 = vsel %vm1851_vm14, %v1854_v14, %v1856_v20  ;;  %vm2017_vm15 = vcmp.lt.s32.totalorder %v2016_v50, 2 }
 0x25a   : > { %v2150_v35 = vadd.s32 4294967294, %v1054_v0  ;;  %v1876_v43 = vadd.s32 1, %v3632_v47  ;;  %vm2021_vm0 = vcmp.eq.s32.totalorder %v2016_v50, 2  ;;  %v1873_v1 = vmul.u32 %v1866_v19, %v1857_v53 }
 0x25b   : > { %vm1875_vm2 = vc.u32 %v3638_v62, %v3631_v40  ;;  %vm2018_vm3 = vcmp.eq.s32.totalorder %v2016_v50, 0  ;;  %vm2014_vm6 = vweird.f32 %v2997_v17  ;;  %v1072_v3 = vsub.s32 4, %v3606_v54 }
 0x25c   : > { %vm2151_vm1 = vcmp.lt.s32.totalorder %v2150_v35, 0  ;;  %v1877_v37 = vsel %vm1875_vm2, %v1876_v43, %v3632_v47  ;;  %vm988_vm4 = vcmp.lt.s32.totalorder %v3072_v55, 0  ;;  %vm987_vm5 = vcmp.le.f32.partialorder %v986_v60, 0.7853982 }
 0x25d   : > { %v1057_v31 = vsel %vm2151_vm1, 0, %v2150_v35  ;;  %v1878_v52 = vadd.s32 %v1877_v37, %v1873_v1  ;;  %v1073_v5 = vsel %vm988_vm4, %v1072_v3, %v3606_v54  ;;  %v1874_v21 = vadd.s32 %v3631_v40, %v3638_v62 }
 0x25e   : > { %v2366_v28 = vpop.eup %2365  ;;  %v1058_v10 = vsub.s32 32, %v1057_v31  ;;  %v1062_v12 = vsub.s32 4294967266, %v1057_v31  ;;  %v1059_v30 = vshll.u32 %v1050_v58, %v1057_v31  ;;  %v1075_v34 = vsel %vm987_vm5, 0, %v1073_v5 }
 0x25f   : > { %v2368_v23 = vpop.eup %2367  ;;  %v2022_v7 = vxor.u32 2147483648, %v2366_v28  ;;  %v1879_v4 = vadd.s32 536870912, %v1878_v52  ;;  %v1079_v29 = vadd.s32 3, %v1075_v34  ;;  %vm1078_vm11 = vweird.f32 %v3072_v55 }
 0x260   : > { %v2019_v8 = vxor.u32 2147483648, %v2368_v23  ;;  %v1060_v45 = vshrl.u32 %v1042_v48, %v1058_v10  ;;  %v1063_v2 = vadd.s32 127, %v1062_v12  ;;  %vm1820_vm13 = vcmp.lt.s32.totalorder %v3170_v18, 0 }
 0x261   : > { %v2023_v46 = vsel %vm2021_vm0, %v2022_v7, %v2368_v23  ;;  %v1880_v22 = vshrl.u32 %v1879_v4, 30  ;;  %v1080_v60 = vand.u32 3, %v1079_v29  ;;  %vm1819_vm12 = vcmp.le.f32.partialorder %v1818_v32, 0.7853982 }
 0x262   : > { %v2020_v15 = vsel %vm2018_vm3, %v2366_v28, %v2019_v8  ;;  %v1061_v39 = vor.u32 %v1060_v45, %v1059_v30  ;;  %v1064_v26 = vshll.u32 %v1063_v2, 23  ;;  %vm1910_vm1 = vweird.f32 %v3170_v18 }
 0x263   : > { %v2024_v13 = vsel %vm2017_vm15, %v2020_v15, %v2023_v46  ;;  %v1881_v61 = vshll.u32 %v1880_v22, 30  ;;  %vm1085_vm8 = vcmp.eq.s32.totalorder %v1080_v60, 2  ;;  %vm1082_vm9 = vcmp.eq.s32.totalorder %v1080_v60, 0 }
 0x264   : > { %v2025_v25 = vsel %vm2014_vm6, nan, %v2024_v13  ;;  %v1065_v36 = vor.u32 4788187, %v1064_v26  ;;  %v1068_v44 = vcvt.s32.f32 %v1061_v39  ;;  %vm1081_vm10 = vcmp.lt.s32.totalorder %v1080_v60, 2 }
 0x265   : > { %2041 = vst [vmem:[%s2745_s20 + $0x78] sm:$0xff] %v2025_v25  ;;  %v1882_v51 = vsub.s32 %v1878_v52, %v1881_v61  ;;  %v1904_v28 = vsub.s32 4, %v1880_v22 }
 0x266   : > { %v1066_v57 = vand.u32 2147483647, %v1065_v36 }
 0x267   : > { %v1884_v38 = vsub.s32 0, %v1882_v51  ;;  %v1905_v48 = vsel %vm1820_vm13, %v1904_v28, %v1880_v22 }
 0x268   : > { %v1069_v6 = vmul.f32 %v1068_v44, %v1066_v57  ;;  %v1907_v8 = vsel %vm1819_vm12, 0, %v1905_v48 }
 0x269   : > { %v2181_v58 = vmin.u32 %v1884_v38, %v1882_v51 }
 0x26a   : > { %v1070_v59 = vxor.u32 2147483648, %v1069_v6 }
 0x26b   : > { %v1886_v11 = vclz %v2181_v58 }
 0x26c   : > { %v1071_v17 = vsel %vm988_vm4, %v1070_v59, %v1069_v6 }
 0x26d   : > { %v1074_v63 = vsel %vm987_vm5, %v3072_v55, %v1071_v17  ;;  %v2182_v41 = vadd.s32 4294967294, %v1886_v11  ;;  %v1911_v55 = vadd.s32 3, %v1907_v8 }
 0x26e   : > { %2369 = vcosq.f32 %v1074_v63 }
 0x26f   : > { %2371 = vsinq.f32 %v1074_v63  ;;  %vm2183_vm7 = vcmp.lt.s32.totalorder %v2182_v41, 0  ;;  %v1912_v10 = vand.u32 3, %v1911_v55 }
 0x270   : > { %v1889_v56 = vsel %vm2183_vm7, 0, %v2182_v41 }
 0x271   : > { %v1890_v27 = vsub.s32 32, %v1889_v56  ;;  %v1894_v49 = vsub.s32 4294967266, %v1889_v56  ;;  %v1891_v19 = vshll.u32 %v1882_v51, %v1889_v56  ;;  %vm1917_vm14 = vcmp.eq.s32.totalorder %v1912_v10, 2 }
 0x272   : > { %vm1914_vm15 = vcmp.eq.s32.totalorder %v1912_v10, 0  ;;  %vm1913_vm0 = vcmp.lt.s32.totalorder %v1912_v10, 2 }
 0x273   : > { %v1892_v33 = vshrl.u32 %v1874_v21, %v1890_v27  ;;  %v1895_v54 = vadd.s32 127, %v1894_v49 }
 0x275   : > { %v1893_v24 = vor.u32 %v1892_v33, %v1891_v19  ;;  %v1896_v9 = vshll.u32 %v1895_v54, 23 }
 0x277   : > { %v1897_v14 = vor.u32 4788187, %v1896_v9  ;;  %v1900_v62 = vcvt.s32.f32 %v1893_v24 }
 0x278   : > { %v2370_v16 = vpop.eup %2369 }
 0x279   : > { %v2372_v47 = vpop.eup %2371  ;;  %v1086_v50 = vxor.u32 2147483648, %v2370_v16  ;;  %v1898_v40 = vand.u32 2147483647, %v1897_v14 }
 0x27a   : > { %v1083_v0 = vxor.u32 2147483648, %v2372_v47 }
 0x27b   : > { %v1087_v20 = vsel %vm1085_vm8, %v1086_v50, %v2372_v47  ;;  %v1901_v43 = vmul.f32 %v1900_v62, %v1898_v40 }
 0x27c   : > { %v1084_v42 = vsel %vm1082_vm9, %v2370_v16, %v1083_v0 }
 0x27d   : > { %v1088_v35 = vsel %vm1081_vm10, %v1084_v42, %v1087_v20  ;;  %v1902_v23 = vxor.u32 2147483648, %v1901_v43 }
 0x27e   : > { %v1089_v53 = vsel %vm1078_vm11, nan, %v1088_v35 }
 0x27f   : > { %2032 = vst [vmem:[%s2745_s20 + $0x30] sm:$0xff] %v1089_v53  ;;  %v1903_v7 = vsel %vm1820_vm13, %v1902_v23, %v1901_v43 }
 0x280   : > { %v1906_v31 = vsel %vm1819_vm12, %v3170_v18, %v1903_v7 }
 0x281   : > { %2373 = vcosq.f32 %v1906_v31 }
 0x282   : > { %2375 = vsinq.f32 %v1906_v31 }
 0x28b   : > { %v2374_v12 = vpop.eup %2373 }
 0x28c   : > { %v2376_v1 = vpop.eup %2375  ;;  %v1918_v46 = vxor.u32 2147483648, %v2374_v12 }
 0x28d   : > { %v1915_v30 = vxor.u32 2147483648, %v2376_v1 }
 0x28e   : > { %v1919_v37 = vsel %vm1917_vm14, %v1918_v46, %v2376_v1 }
 0x28f   : > { %v1916_v15 = vsel %vm1914_vm15, %v2374_v12, %v1915_v30 }
 0x290   : > { %v1920_v32 = vsel %vm1913_vm0, %v1916_v15, %v1919_v37 }
 0x291   : > { %v1921_v45 = vsel %vm1910_vm1, nan, %v1920_v32 }
 0x292   : > { %2040 = vst [vmem:[%s2745_s20 + $0x70] sm:$0xff] %v1921_v45 }
 0x293 PF: > { %s12_s9 = sadd.s32 1, %s2383_s9  }
 0x294   : > { %p9_p4 = scmp.ge.s32.totalorder %s12_s9, 4  }
 0x296   :  { %11 = sbr.rel (!%p9_p4) target bundleno = 1 (0x1), region = 58 }

</bundles_post_ra>
